<compile_context>
chip_gen: v7x
topology: tpu7x:2x2x1
jax: 0.10.0
libtpu: 0.0.40
codegen_flags: <defaults>
</compile_context>

<pallas_src>
import functools
import math

import jax
import jax.numpy as jnp
from jax.experimental import pallas as pl
from jax.experimental.pallas import tpu as pltpu


# ------------------------------ helpers ------------------------------------

def _layernorm(x, g, b, eps):
    mean = jnp.mean(x, axis=-1, keepdims=True)
    var = jnp.mean(jnp.square(x - mean), axis=-1, keepdims=True)
    return (x - mean) * jax.lax.rsqrt(var + eps) * g + b


# ------------------------ fully fused forward kernel -----------------------

def _spec2label_kernel(x_ref, pos_ref, inw_ref, inb_ref,
                       wqkv_ref, bqkv_ref, wo_ref, bo_ref,
                       ln1g_ref, ln1b_ref, w1_ref, b1_ref, w2_ref, b2_ref,
                       ln2g_ref, ln2b_ref,
                       fc1w_ref, fc1b_ref, fc2w_ref, fc2b_ref,
                       o_ref, *, n_heads, n_layers, eps):
    f32 = jnp.float32
    x = x_ref[0].astype(f32)                                   # (S, F)
    C = inw_ref.shape[1]
    H = n_heads
    Dh = C // H
    scale = 1.0 / math.sqrt(Dh)

    # Input projection + positional embedding (keep src_start for the
    # encode_src residual).
    start = jnp.dot(x, inw_ref[...], preferred_element_type=f32) + inb_ref[...]
    h = start + pos_ref[...].astype(f32)                       # (S, C)

    for l in range(n_layers):                                  # static unroll
        # Merged Q/K/V projection: one (S, C) x (C, 3C) matmul.
        qkv = jnp.dot(h, wqkv_ref[l], preferred_element_type=f32) + bqkv_ref[l]
        q = qkv[:, :C] * scale
        k = qkv[:, C:2 * C]
        v = qkv[:, 2 * C:]
        wo = wo_ref[l]                                         # (C, C)

        acc = jnp.zeros((h.shape[0], C), f32)
        for hh in range(H):                                    # static unroll
            sl = slice(hh * Dh, (hh + 1) * Dh)
            s = jax.lax.dot_general(q[:, sl], k[:, sl],
                                    (((1,), (1,)), ((), ())),
                                    preferred_element_type=f32)  # (S, S)
            s = s - jnp.max(s, axis=-1, keepdims=True)
            p = jnp.exp(s)
            p = p / jnp.sum(p, axis=-1, keepdims=True)
            oh = jnp.dot(p, v[:, sl], preferred_element_type=f32)  # (S, Dh)
            # Fold the output projection into the per-head accumulation.
            acc = acc + jnp.dot(oh, wo[sl, :], preferred_element_type=f32)
        attn = acc + bo_ref[l]

        # Residual + LayerNorm 1 (post-norm, PyTorch default).
        h = _layernorm(h + attn, ln1g_ref[l], ln1b_ref[l], eps)

        # FFN with fused ReLU.
        ff = jnp.dot(h, w1_ref[l], preferred_element_type=f32) + b1_ref[l]
        ff = jnp.maximum(ff, 0.0)
        ff = jnp.dot(ff, w2_ref[l], preferred_element_type=f32) + b2_ref[l]

        # Residual + LayerNorm 2.
        h = _layernorm(h + ff, ln2g_ref[l], ln2b_ref[l], eps)

    # encode_src residual -> relu -> fc1 -> relu -> fc2.
    y = jnp.maximum(h + start, 0.0)
    y = jnp.dot(y, fc1w_ref[...], preferred_element_type=f32) + fc1b_ref[...]
    y = jnp.maximum(y, 0.0)
    # TODO(synk): nn.Dropout layers (p=0.2, incl. in-layer dropouts) are identity in eval mode.
    y = jnp.dot(y, fc2w_ref[...], preferred_element_type=f32) + fc2b_ref[...]
    o_ref[...] = y.astype(o_ref.dtype)


def spec2label_forward(params, x, *, n_heads, n_layers, eps=1e-5):
    B, S, F = x.shape
    C = params['in_w'].shape[1]
    hidden = params['w1'].shape[-1]
    fc1_dim = params['fc1_w'].shape[1]
    n_out = params['fc2_w'].shape[1]
    pos = params['pos_emb'][:S]

    operands = (
        x, pos,
        params['in_w'], params['in_b'],
        params['wqkv'], params['bqkv'], params['wo'], params['bo'],
        params['ln1_g'], params['ln1_b'],
        params['w1'], params['b1'], params['w2'], params['b2'],
        params['ln2_g'], params['ln2_b'],
        params['fc1_w'], params['fc1_b'], params['fc2_w'], params['fc2_b'],
    )

    def _const_spec(shape):
        zeros = (0,) * len(shape)
        return pl.BlockSpec(shape, lambda b, _z=zeros: _z)

    in_specs = [pl.BlockSpec((1, S, F), lambda b: (b, 0, 0))]
    in_specs += [_const_spec(a.shape) for a in operands[1:]]

    Dh = C // n_heads
    flops = B * (2 * S * F * C
                 + n_layers * (2 * S * C * 3 * C
                               + n_heads * (4 * S * S * Dh + 2 * S * Dh * C)
                               + 4 * S * C * hidden)
                 + 2 * S * C * fc1_dim + 2 * S * fc1_dim * n_out)
    transcendentals = B * n_layers * n_heads * S * S
    bytes_accessed = 4 * (sum(int(a.size) for a in operands) + B * S * n_out)

    return pl.pallas_call(
        functools.partial(_spec2label_kernel, n_heads=n_heads,
                          n_layers=n_layers, eps=eps),
        grid=(B,),
        in_specs=in_specs,
        out_specs=pl.BlockSpec((S, n_out), lambda b: (b, 0)),
        out_shape=jax.ShapeDtypeStruct((B * S, n_out), x.dtype),
        compiler_params=pltpu.CompilerParams(
            dimension_semantics=("parallel",)),
        cost_estimate=pl.CostEstimate(flops=flops,
                                      transcendentals=transcendentals,
                                      bytes_accessed=bytes_accessed),
    )(*operands)


# --------------------------- parameter creation ----------------------------

def _dense_init(key, fan_in, fan_out):
    wk, bk = jax.random.split(key)
    bound = 1.0 / math.sqrt(fan_in)
    w = jax.random.uniform(wk, (fan_in, fan_out), jnp.float32, -bound, bound)
    b = jax.random.uniform(bk, (fan_out,), jnp.float32, -bound, bound)
    return w, b


def init_params(key, n_inputs, n_outputs, channels, n_heads, n_layers):
    C = channels
    hidden = 4 * C
    keys = jax.random.split(key, 4 + n_layers)
    params = {
        'pos_emb': 0.02 * jax.random.normal(keys[0], (1024, C), jnp.float32),
    }
    in_w, in_b = _dense_init(keys[1], n_inputs, C)
    params['in_w'], params['in_b'] = in_w, in_b.reshape(1, C)
    fc1_w, fc1_b = _dense_init(keys[2], C, 64)
    fc2_w, fc2_b = _dense_init(keys[3], 64, n_outputs)
    params['fc1_w'], params['fc1_b'] = fc1_w, fc1_b.reshape(1, 64)
    params['fc2_w'], params['fc2_b'] = fc2_w, fc2_b.reshape(1, n_outputs)

    wqkv, bqkv, wo, bo, w1, b1, w2, b2 = ([] for _ in range(8))
    for l in range(n_layers):
        lk = jax.random.split(keys[4 + l], 6)
        wq, bq_ = _dense_init(lk[0], C, C)
        wk_, bk_ = _dense_init(lk[1], C, C)
        wv, bv = _dense_init(lk[2], C, C)
        wqkv.append(jnp.concatenate([wq, wk_, wv], axis=1))            # (C, 3C)
        bqkv.append(jnp.concatenate([bq_, bk_, bv]).reshape(1, 3 * C))
        w, b = _dense_init(lk[3], C, C)
        wo.append(w); bo.append(b.reshape(1, C))
        w, b = _dense_init(lk[4], C, hidden)
        w1.append(w); b1.append(b.reshape(1, hidden))
        w, b = _dense_init(lk[5], hidden, C)
        w2.append(w); b2.append(b.reshape(1, C))

    params['wqkv'] = jnp.stack(wqkv); params['bqkv'] = jnp.stack(bqkv)
    params['wo'] = jnp.stack(wo); params['bo'] = jnp.stack(bo)
    params['w1'] = jnp.stack(w1); params['b1'] = jnp.stack(b1)
    params['w2'] = jnp.stack(w2); params['b2'] = jnp.stack(b2)
    ones = jnp.ones((n_layers, 1, C), jnp.float32)
    zeros = jnp.zeros((n_layers, 1, C), jnp.float32)
    params['ln1_g'], params['ln1_b'] = ones, zeros
    params['ln2_g'], params['ln2_b'] = ones, zeros
    return params


# --------------------------- pure-JAX reference -----------------------------

def reference_forward(params, x, *, n_heads, n_layers, eps=1e-5):
    B, S, _ = x.shape
    C = params['in_w'].shape[1]
    H = n_heads
    Dh = C // H
    start = jnp.einsum('bsf,fc->bsc', x, params['in_w']) + params['in_b']
    h = start + params['pos_emb'][:S][None]
    for l in range(n_layers):
        qkv = jnp.einsum('bsc,cd->bsd', h, params['wqkv'][l]) + params['bqkv'][l]
        q, k, v = jnp.split(qkv, 3, axis=-1)
        q = q.reshape(B, S, H, Dh)
        k = k.reshape(B, S, H, Dh)
        v = v.reshape(B, S, H, Dh)
        s = jnp.einsum('bqhd,bkhd->bhqk', q, k) / math.sqrt(Dh)
        p = jax.nn.softmax(s, axis=-1)
        o = jnp.einsum('bhqk,bkhd->bqhd', p, v).reshape(B, S, C)
        attn = jnp.einsum('bsc,cd->bsd', o, params['wo'][l]) + params['bo'][l]
        h = _layernorm(h + attn, params['ln1_g'][l], params['ln1_b'][l], eps)
        ff = jnp.maximum(
            jnp.einsum('bsc,ch->bsh', h, params['w1'][l]) + params['b1'][l], 0.0)
        ff = jnp.einsum('bsh,hc->bsc', ff, params['w2'][l]) + params['b2'][l]
        h = _layernorm(h + ff, params['ln2_g'][l], params['ln2_b'][l], eps)
    y = jnp.maximum(h + start, 0.0).reshape(B * S, C)
    y = jnp.maximum(y @ params['fc1_w'] + params['fc1_b'], 0.0)
    return y @ params['fc2_w'] + params['fc2_b']


# ---------------------------------- main ------------------------------------

if __name__ == "__main__":
    BATCH, SEQ = 2, 8
    N_ENCODER_INPUTS, N_OUTPUTS = 16, 4
    CHANNELS, N_HEADS, N_LAYERS = 32, 4, 2

    key = jax.random.PRNGKey(0)
    pkey, xkey = jax.random.split(key)
    params = init_params(pkey, N_ENCODER_INPUTS, N_OUTPUTS,
                         CHANNELS, N_HEADS, N_LAYERS)
    x = jax.random.normal(xkey, (BATCH, SEQ, N_ENCODER_INPUTS), dtype=jnp.float32)

    fwd = jax.jit(functools.partial(spec2label_forward,
                                    n_heads=N_HEADS, n_layers=N_LAYERS))
    out = jax.block_until_ready(fwd(params, x))
    assert out.shape == (BATCH * SEQ, N_OUTPUTS), out.shape
    assert bool(jnp.all(jnp.isfinite(out)))

    # Sanity check against a pure-JAX reference (loose tol: XLA/MXU precision modes).
    with jax.default_matmul_precision('highest'):
        ref = reference_forward(params, x, n_heads=N_HEADS, n_layers=N_LAYERS)
    assert bool(jnp.allclose(out, ref, rtol=5e-2, atol=5e-2)), \
        float(jnp.max(jnp.abs(out - ref)))

    print("KERNEL_OK")
</pallas_src>

<mosaic_0001>
module attributes {stable_mosaic.version = 11 : i64} {
  func.func @_spec2label_kernel(%arg0: i32, %arg1: memref<1x8x16xf32, #tpu.memory_space<vmem>>, %arg2: memref<8x32xf32, #tpu.memory_space<vmem>>, %arg3: memref<16x32xf32, #tpu.memory_space<vmem>>, %arg4: memref<1x32xf32, #tpu.memory_space<vmem>>, %arg5: memref<2x32x96xf32, #tpu.memory_space<vmem>>, %arg6: memref<2x1x96xf32, #tpu.memory_space<vmem>>, %arg7: memref<2x32x32xf32, #tpu.memory_space<vmem>>, %arg8: memref<2x1x32xf32, #tpu.memory_space<vmem>>, %arg9: memref<2x1x32xf32, #tpu.memory_space<vmem>>, %arg10: memref<2x1x32xf32, #tpu.memory_space<vmem>>, %arg11: memref<2x32x128xf32, #tpu.memory_space<vmem>>, %arg12: memref<2x1x128xf32, #tpu.memory_space<vmem>>, %arg13: memref<2x128x32xf32, #tpu.memory_space<vmem>>, %arg14: memref<2x1x32xf32, #tpu.memory_space<vmem>>, %arg15: memref<2x1x32xf32, #tpu.memory_space<vmem>>, %arg16: memref<2x1x32xf32, #tpu.memory_space<vmem>>, %arg17: memref<32x64xf32, #tpu.memory_space<vmem>>, %arg18: memref<1x64xf32, #tpu.memory_space<vmem>>, %arg19: memref<64x4xf32, #tpu.memory_space<vmem>>, %arg20: memref<1x4xf32, #tpu.memory_space<vmem>>, %arg21: memref<8x4xf32, #tpu.memory_space<vmem>>) attributes {dimension_semantics = [#tpu.dimension_semantics<parallel>], iteration_bounds = array<i64: 2>, scalar_prefetch = 0 : i64, scratch_operands = 0 : i64, tpu.core_type = #tpu.core_type<tc>, window_params = [{transform_indices = @transform_0, window_bounds = array<i64: 1, 8, 16>}, {pipeline_mode = #tpu.pipeline_mode<synchronous>, transform_indices = @transform_1, window_bounds = array<i64: 8, 32>}, {pipeline_mode = #tpu.pipeline_mode<synchronous>, transform_indices = @transform_2, window_bounds = array<i64: 16, 32>}, {pipeline_mode = #tpu.pipeline_mode<synchronous>, transform_indices = @transform_3, window_bounds = array<i64: 1, 32>}, {pipeline_mode = #tpu.pipeline_mode<synchronous>, transform_indices = @transform_4, window_bounds = array<i64: 2, 32, 96>}, {pipeline_mode = #tpu.pipeline_mode<synchronous>, transform_indices = @transform_5, window_bounds = array<i64: 2, 1, 96>}, {pipeline_mode = #tpu.pipeline_mode<synchronous>, transform_indices = @transform_6, window_bounds = array<i64: 2, 32, 32>}, {pipeline_mode = #tpu.pipeline_mode<synchronous>, transform_indices = @transform_7, window_bounds = array<i64: 2, 1, 32>}, {pipeline_mode = #tpu.pipeline_mode<synchronous>, transform_indices = @transform_8, window_bounds = array<i64: 2, 1, 32>}, {pipeline_mode = #tpu.pipeline_mode<synchronous>, transform_indices = @transform_9, window_bounds = array<i64: 2, 1, 32>}, {pipeline_mode = #tpu.pipeline_mode<synchronous>, transform_indices = @transform_10, window_bounds = array<i64: 2, 32, 128>}, {pipeline_mode = #tpu.pipeline_mode<synchronous>, transform_indices = @transform_11, window_bounds = array<i64: 2, 1, 128>}, {pipeline_mode = #tpu.pipeline_mode<synchronous>, transform_indices = @transform_12, window_bounds = array<i64: 2, 128, 32>}, {pipeline_mode = #tpu.pipeline_mode<synchronous>, transform_indices = @transform_13, window_bounds = array<i64: 2, 1, 32>}, {pipeline_mode = #tpu.pipeline_mode<synchronous>, transform_indices = @transform_14, window_bounds = array<i64: 2, 1, 32>}, {pipeline_mode = #tpu.pipeline_mode<synchronous>, transform_indices = @transform_15, window_bounds = array<i64: 2, 1, 32>}, {pipeline_mode = #tpu.pipeline_mode<synchronous>, transform_indices = @transform_16, window_bounds = array<i64: 32, 64>}, {pipeline_mode = #tpu.pipeline_mode<synchronous>, transform_indices = @transform_17, window_bounds = array<i64: 1, 64>}, {pipeline_mode = #tpu.pipeline_mode<synchronous>, transform_indices = @transform_18, window_bounds = array<i64: 64, 4>}, {pipeline_mode = #tpu.pipeline_mode<synchronous>, transform_indices = @transform_19, window_bounds = array<i64: 1, 4>}, {transform_indices = @transform_20, window_bounds = array<i64: 8, 4>}]} {
    %c0 = arith.constant 0 : index
    %c0_0 = arith.constant 0 : index
    %c0_1 = arith.constant 0 : index
    %0 = vector.load %arg1[%c0, %c0_0, %c0_1] : memref<1x8x16xf32, #tpu.memory_space<vmem>>, vector<1x8x16xf32>
    %1 = vector.shape_cast %0 : vector<1x8x16xf32> to vector<8x16xf32>
    %c0_2 = arith.constant 0 : index
    %c0_3 = arith.constant 0 : index
    %2 = vector.load %arg3[%c0_2, %c0_3] : memref<16x32xf32, #tpu.memory_space<vmem>>, vector<16x32xf32>
    %cst = arith.constant dense<0.000000e+00> : vector<8x32xf32>
    %3 = tpu.matmul %1, %2, %cst {dimension_numbers = #tpu.dot_dimension_numbers<[1], [0], [0], [1], [0, 0, 1, 1], [], []>} : vector<8x16xf32>, vector<16x32xf32>, vector<8x32xf32> -> vector<8x32xf32>
    %c0_4 = arith.constant 0 : index
    %c0_5 = arith.constant 0 : index
    %4 = vector.load %arg4[%c0_4, %c0_5] : memref<1x32xf32, #tpu.memory_space<vmem>>, vector<1x32xf32>
    %5 = vector.broadcast %4 : vector<1x32xf32> to vector<8x32xf32>
    %6 = arith.addf %3, %5 : vector<8x32xf32>
    %c0_6 = arith.constant 0 : index
    %c0_7 = arith.constant 0 : index
    %7 = vector.load %arg2[%c0_6, %c0_7] : memref<8x32xf32, #tpu.memory_space<vmem>>, vector<8x32xf32>
    %8 = arith.addf %6, %7 : vector<8x32xf32>
    %c0_8 = arith.constant 0 : index
    %c0_9 = arith.constant 0 : index
    %c0_10 = arith.constant 0 : index
    %9 = vector.load %arg5[%c0_8, %c0_9, %c0_10] : memref<2x32x96xf32, #tpu.memory_space<vmem>>, vector<1x32x96xf32>
    %10 = vector.shape_cast %9 : vector<1x32x96xf32> to vector<32x96xf32>
    %cst_11 = arith.constant dense<0.000000e+00> : vector<8x96xf32>
    %11 = tpu.matmul %8, %10, %cst_11 {dimension_numbers = #tpu.dot_dimension_numbers<[1], [0], [0], [1], [0, 0, 1, 1], [], []>} : vector<8x32xf32>, vector<32x96xf32>, vector<8x96xf32> -> vector<8x96xf32>
    %c0_12 = arith.constant 0 : index
    %c0_13 = arith.constant 0 : index
    %c0_14 = arith.constant 0 : index
    %12 = vector.load %arg6[%c0_12, %c0_13, %c0_14] : memref<2x1x96xf32, #tpu.memory_space<vmem>>, vector<1x1x96xf32>
    %13 = vector.shape_cast %12 : vector<1x1x96xf32> to vector<1x96xf32>
    %14 = vector.broadcast %13 : vector<1x96xf32> to vector<8x96xf32>
    %15 = arith.addf %11, %14 : vector<8x96xf32>
    %16 = vector.extract_strided_slice %15 {offsets = [0, 0], sizes = [8, 32], strides = [1, 1]} : vector<8x96xf32> to vector<8x32xf32>
    %cst_15 = arith.constant 0.353553385 : f32
    %17 = vector.broadcast %cst_15 : f32 to vector<8x32xf32>
    %18 = arith.mulf %16, %17 : vector<8x32xf32>
    %19 = vector.extract_strided_slice %15 {offsets = [0, 32], sizes = [8, 32], strides = [1, 1]} : vector<8x96xf32> to vector<8x32xf32>
    %20 = vector.extract_strided_slice %15 {offsets = [0, 64], sizes = [8, 32], strides = [1, 1]} : vector<8x96xf32> to vector<8x32xf32>
    %c0_16 = arith.constant 0 : index
    %c0_17 = arith.constant 0 : index
    %c0_18 = arith.constant 0 : index
    %21 = vector.load %arg7[%c0_16, %c0_17, %c0_18] : memref<2x32x32xf32, #tpu.memory_space<vmem>>, vector<1x32x32xf32>
    %22 = vector.shape_cast %21 : vector<1x32x32xf32> to vector<32x32xf32>
    %cst_19 = arith.constant 0.000000e+00 : f32
    %23 = vector.broadcast %cst_19 : f32 to vector<8x32xf32>
    %24 = vector.extract_strided_slice %18 {offsets = [0, 0], sizes = [8, 8], strides = [1, 1]} : vector<8x32xf32> to vector<8x8xf32>
    %25 = vector.extract_strided_slice %19 {offsets = [0, 0], sizes = [8, 8], strides = [1, 1]} : vector<8x32xf32> to vector<8x8xf32>
    %cst_20 = arith.constant dense<0.000000e+00> : vector<8x8xf32>
    %26 = tpu.matmul %24, %25, %cst_20 {dimension_numbers = #tpu.dot_dimension_numbers<[1], [1], [0], [0], [0, 0, 1, 0], [], []>} : vector<8x8xf32>, vector<8x8xf32>, vector<8x8xf32> -> vector<8x8xf32>
    %cst_21 = arith.constant dense<0xFF800000> : vector<8xf32>
    %27 = vector.multi_reduction <maximumf>, %26, %cst_21 [1] : vector<8x8xf32> to vector<8xf32>
    %28 = vector.shape_cast %27 : vector<8xf32> to vector<8x1xf32>
    %29 = vector.broadcast %28 : vector<8x1xf32> to vector<8x8xf32>
    %30 = arith.subf %26, %29 : vector<8x8xf32>
    %31 = math.exp %30 : vector<8x8xf32>
    %cst_22 = arith.constant dense<0.000000e+00> : vector<8xf32>
    %32 = vector.multi_reduction <add>, %31, %cst_22 [1] : vector<8x8xf32> to vector<8xf32>
    %33 = vector.shape_cast %32 : vector<8xf32> to vector<8x1xf32>
    %34 = vector.broadcast %33 : vector<8x1xf32> to vector<8x8xf32>
    %35 = arith.divf %31, %34 : vector<8x8xf32>
    %36 = vector.extract_strided_slice %20 {offsets = [0, 0], sizes = [8, 8], strides = [1, 1]} : vector<8x32xf32> to vector<8x8xf32>
    %cst_23 = arith.constant dense<0.000000e+00> : vector<8x8xf32>
    %37 = tpu.matmul %35, %36, %cst_23 {dimension_numbers = #tpu.dot_dimension_numbers<[1], [0], [0], [1], [0, 0, 1, 1], [], []>} : vector<8x8xf32>, vector<8x8xf32>, vector<8x8xf32> -> vector<8x8xf32>
    %38 = vector.extract_strided_slice %22 {offsets = [0, 0], sizes = [8, 32], strides = [1, 1]} : vector<32x32xf32> to vector<8x32xf32>
    %cst_24 = arith.constant dense<0.000000e+00> : vector<8x32xf32>
    %39 = tpu.matmul %37, %38, %cst_24 {dimension_numbers = #tpu.dot_dimension_numbers<[1], [0], [0], [1], [0, 0, 1, 1], [], []>} : vector<8x8xf32>, vector<8x32xf32>, vector<8x32xf32> -> vector<8x32xf32>
    %40 = arith.addf %23, %39 : vector<8x32xf32>
    %41 = vector.extract_strided_slice %18 {offsets = [0, 8], sizes = [8, 8], strides = [1, 1]} : vector<8x32xf32> to vector<8x8xf32>
    %42 = vector.extract_strided_slice %19 {offsets = [0, 8], sizes = [8, 8], strides = [1, 1]} : vector<8x32xf32> to vector<8x8xf32>
    %cst_25 = arith.constant dense<0.000000e+00> : vector<8x8xf32>
    %43 = tpu.matmul %41, %42, %cst_25 {dimension_numbers = #tpu.dot_dimension_numbers<[1], [1], [0], [0], [0, 0, 1, 0], [], []>} : vector<8x8xf32>, vector<8x8xf32>, vector<8x8xf32> -> vector<8x8xf32>
    %cst_26 = arith.constant dense<0xFF800000> : vector<8xf32>
    %44 = vector.multi_reduction <maximumf>, %43, %cst_26 [1] : vector<8x8xf32> to vector<8xf32>
    %45 = vector.shape_cast %44 : vector<8xf32> to vector<8x1xf32>
    %46 = vector.broadcast %45 : vector<8x1xf32> to vector<8x8xf32>
    %47 = arith.subf %43, %46 : vector<8x8xf32>
    %48 = math.exp %47 : vector<8x8xf32>
    %cst_27 = arith.constant dense<0.000000e+00> : vector<8xf32>
    %49 = vector.multi_reduction <add>, %48, %cst_27 [1] : vector<8x8xf32> to vector<8xf32>
    %50 = vector.shape_cast %49 : vector<8xf32> to vector<8x1xf32>
    %51 = vector.broadcast %50 : vector<8x1xf32> to vector<8x8xf32>
    %52 = arith.divf %48, %51 : vector<8x8xf32>
    %53 = vector.extract_strided_slice %20 {offsets = [0, 8], sizes = [8, 8], strides = [1, 1]} : vector<8x32xf32> to vector<8x8xf32>
    %cst_28 = arith.constant dense<0.000000e+00> : vector<8x8xf32>
    %54 = tpu.matmul %52, %53, %cst_28 {dimension_numbers = #tpu.dot_dimension_numbers<[1], [0], [0], [1], [0, 0, 1, 1], [], []>} : vector<8x8xf32>, vector<8x8xf32>, vector<8x8xf32> -> vector<8x8xf32>
    %55 = vector.extract_strided_slice %22 {offsets = [8, 0], sizes = [8, 32], strides = [1, 1]} : vector<32x32xf32> to vector<8x32xf32>
    %cst_29 = arith.constant dense<0.000000e+00> : vector<8x32xf32>
    %56 = tpu.matmul %54, %55, %cst_29 {dimension_numbers = #tpu.dot_dimension_numbers<[1], [0], [0], [1], [0, 0, 1, 1], [], []>} : vector<8x8xf32>, vector<8x32xf32>, vector<8x32xf32> -> vector<8x32xf32>
    %57 = arith.addf %40, %56 : vector<8x32xf32>
    %58 = vector.extract_strided_slice %18 {offsets = [0, 16], sizes = [8, 8], strides = [1, 1]} : vector<8x32xf32> to vector<8x8xf32>
    %59 = vector.extract_strided_slice %19 {offsets = [0, 16], sizes = [8, 8], strides = [1, 1]} : vector<8x32xf32> to vector<8x8xf32>
    %cst_30 = arith.constant dense<0.000000e+00> : vector<8x8xf32>
    %60 = tpu.matmul %58, %59, %cst_30 {dimension_numbers = #tpu.dot_dimension_numbers<[1], [1], [0], [0], [0, 0, 1, 0], [], []>} : vector<8x8xf32>, vector<8x8xf32>, vector<8x8xf32> -> vector<8x8xf32>
    %cst_31 = arith.constant dense<0xFF800000> : vector<8xf32>
    %61 = vector.multi_reduction <maximumf>, %60, %cst_31 [1] : vector<8x8xf32> to vector<8xf32>
    %62 = vector.shape_cast %61 : vector<8xf32> to vector<8x1xf32>
    %63 = vector.broadcast %62 : vector<8x1xf32> to vector<8x8xf32>
    %64 = arith.subf %60, %63 : vector<8x8xf32>
    %65 = math.exp %64 : vector<8x8xf32>
    %cst_32 = arith.constant dense<0.000000e+00> : vector<8xf32>
    %66 = vector.multi_reduction <add>, %65, %cst_32 [1] : vector<8x8xf32> to vector<8xf32>
    %67 = vector.shape_cast %66 : vector<8xf32> to vector<8x1xf32>
    %68 = vector.broadcast %67 : vector<8x1xf32> to vector<8x8xf32>
    %69 = arith.divf %65, %68 : vector<8x8xf32>
    %70 = vector.extract_strided_slice %20 {offsets = [0, 16], sizes = [8, 8], strides = [1, 1]} : vector<8x32xf32> to vector<8x8xf32>
    %cst_33 = arith.constant dense<0.000000e+00> : vector<8x8xf32>
    %71 = tpu.matmul %69, %70, %cst_33 {dimension_numbers = #tpu.dot_dimension_numbers<[1], [0], [0], [1], [0, 0, 1, 1], [], []>} : vector<8x8xf32>, vector<8x8xf32>, vector<8x8xf32> -> vector<8x8xf32>
    %72 = vector.extract_strided_slice %22 {offsets = [16, 0], sizes = [8, 32], strides = [1, 1]} : vector<32x32xf32> to vector<8x32xf32>
    %cst_34 = arith.constant dense<0.000000e+00> : vector<8x32xf32>
    %73 = tpu.matmul %71, %72, %cst_34 {dimension_numbers = #tpu.dot_dimension_numbers<[1], [0], [0], [1], [0, 0, 1, 1], [], []>} : vector<8x8xf32>, vector<8x32xf32>, vector<8x32xf32> -> vector<8x32xf32>
    %74 = arith.addf %57, %73 : vector<8x32xf32>
    %75 = vector.extract_strided_slice %18 {offsets = [0, 24], sizes = [8, 8], strides = [1, 1]} : vector<8x32xf32> to vector<8x8xf32>
    %76 = vector.extract_strided_slice %19 {offsets = [0, 24], sizes = [8, 8], strides = [1, 1]} : vector<8x32xf32> to vector<8x8xf32>
    %cst_35 = arith.constant dense<0.000000e+00> : vector<8x8xf32>
    %77 = tpu.matmul %75, %76, %cst_35 {dimension_numbers = #tpu.dot_dimension_numbers<[1], [1], [0], [0], [0, 0, 1, 0], [], []>} : vector<8x8xf32>, vector<8x8xf32>, vector<8x8xf32> -> vector<8x8xf32>
    %cst_36 = arith.constant dense<0xFF800000> : vector<8xf32>
    %78 = vector.multi_reduction <maximumf>, %77, %cst_36 [1] : vector<8x8xf32> to vector<8xf32>
    %79 = vector.shape_cast %78 : vector<8xf32> to vector<8x1xf32>
    %80 = vector.broadcast %79 : vector<8x1xf32> to vector<8x8xf32>
    %81 = arith.subf %77, %80 : vector<8x8xf32>
    %82 = math.exp %81 : vector<8x8xf32>
    %cst_37 = arith.constant dense<0.000000e+00> : vector<8xf32>
    %83 = vector.multi_reduction <add>, %82, %cst_37 [1] : vector<8x8xf32> to vector<8xf32>
    %84 = vector.shape_cast %83 : vector<8xf32> to vector<8x1xf32>
    %85 = vector.broadcast %84 : vector<8x1xf32> to vector<8x8xf32>
    %86 = arith.divf %82, %85 : vector<8x8xf32>
    %87 = vector.extract_strided_slice %20 {offsets = [0, 24], sizes = [8, 8], strides = [1, 1]} : vector<8x32xf32> to vector<8x8xf32>
    %cst_38 = arith.constant dense<0.000000e+00> : vector<8x8xf32>
    %88 = tpu.matmul %86, %87, %cst_38 {dimension_numbers = #tpu.dot_dimension_numbers<[1], [0], [0], [1], [0, 0, 1, 1], [], []>} : vector<8x8xf32>, vector<8x8xf32>, vector<8x8xf32> -> vector<8x8xf32>
    %89 = vector.extract_strided_slice %22 {offsets = [24, 0], sizes = [8, 32], strides = [1, 1]} : vector<32x32xf32> to vector<8x32xf32>
    %cst_39 = arith.constant dense<0.000000e+00> : vector<8x32xf32>
    %90 = tpu.matmul %88, %89, %cst_39 {dimension_numbers = #tpu.dot_dimension_numbers<[1], [0], [0], [1], [0, 0, 1, 1], [], []>} : vector<8x8xf32>, vector<8x32xf32>, vector<8x32xf32> -> vector<8x32xf32>
    %91 = arith.addf %74, %90 : vector<8x32xf32>
    %c0_40 = arith.constant 0 : index
    %c0_41 = arith.constant 0 : index
    %c0_42 = arith.constant 0 : index
    %92 = vector.load %arg8[%c0_40, %c0_41, %c0_42] : memref<2x1x32xf32, #tpu.memory_space<vmem>>, vector<1x1x32xf32>
    %93 = vector.shape_cast %92 : vector<1x1x32xf32> to vector<1x32xf32>
    %94 = vector.broadcast %93 : vector<1x32xf32> to vector<8x32xf32>
    %95 = arith.addf %91, %94 : vector<8x32xf32>
    %96 = arith.addf %8, %95 : vector<8x32xf32>
    %c0_43 = arith.constant 0 : index
    %c0_44 = arith.constant 0 : index
    %c0_45 = arith.constant 0 : index
    %97 = vector.load %arg9[%c0_43, %c0_44, %c0_45] : memref<2x1x32xf32, #tpu.memory_space<vmem>>, vector<1x1x32xf32>
    %98 = vector.shape_cast %97 : vector<1x1x32xf32> to vector<1x32xf32>
    %c0_46 = arith.constant 0 : index
    %c0_47 = arith.constant 0 : index
    %c0_48 = arith.constant 0 : index
    %99 = vector.load %arg10[%c0_46, %c0_47, %c0_48] : memref<2x1x32xf32, #tpu.memory_space<vmem>>, vector<1x1x32xf32>
    %100 = vector.shape_cast %99 : vector<1x1x32xf32> to vector<1x32xf32>
    %cst_49 = arith.constant dense<0.000000e+00> : vector<8xf32>
    %101 = vector.multi_reduction <add>, %96, %cst_49 [1] : vector<8x32xf32> to vector<8xf32>
    %102 = vector.shape_cast %101 : vector<8xf32> to vector<8x1xf32>
    %cst_50 = arith.constant 3.200000e+01 : f32
    %103 = vector.broadcast %cst_50 : f32 to vector<8x1xf32>
    %104 = arith.divf %102, %103 : vector<8x1xf32>
    %105 = vector.broadcast %104 : vector<8x1xf32> to vector<8x32xf32>
    %106 = arith.subf %96, %105 : vector<8x32xf32>
    %107 = arith.mulf %106, %106 : vector<8x32xf32>
    %cst_51 = arith.constant dense<0.000000e+00> : vector<8xf32>
    %108 = vector.multi_reduction <add>, %107, %cst_51 [1] : vector<8x32xf32> to vector<8xf32>
    %109 = vector.shape_cast %108 : vector<8xf32> to vector<8x1xf32>
    %cst_52 = arith.constant 3.200000e+01 : f32
    %110 = vector.broadcast %cst_52 : f32 to vector<8x1xf32>
    %111 = arith.divf %109, %110 : vector<8x1xf32>
    %112 = vector.broadcast %104 : vector<8x1xf32> to vector<8x32xf32>
    %113 = arith.subf %96, %112 : vector<8x32xf32>
    %cst_53 = arith.constant 9.99999974E-6 : f32
    %114 = vector.broadcast %cst_53 : f32 to vector<8x1xf32>
    %115 = arith.addf %111, %114 : vector<8x1xf32>
    %116 = math.rsqrt %115 : vector<8x1xf32>
    %117 = vector.broadcast %116 : vector<8x1xf32> to vector<8x32xf32>
    %118 = arith.mulf %113, %117 : vector<8x32xf32>
    %119 = vector.broadcast %98 : vector<1x32xf32> to vector<8x32xf32>
    %120 = arith.mulf %118, %119 : vector<8x32xf32>
    %121 = vector.broadcast %100 : vector<1x32xf32> to vector<8x32xf32>
    %122 = arith.addf %120, %121 : vector<8x32xf32>
    %c0_54 = arith.constant 0 : index
    %c0_55 = arith.constant 0 : index
    %c0_56 = arith.constant 0 : index
    %123 = vector.load %arg11[%c0_54, %c0_55, %c0_56] : memref<2x32x128xf32, #tpu.memory_space<vmem>>, vector<1x32x128xf32>
    %124 = vector.shape_cast %123 : vector<1x32x128xf32> to vector<32x128xf32>
    %cst_57 = arith.constant dense<0.000000e+00> : vector<8x128xf32>
    %125 = tpu.matmul %122, %124, %cst_57 {dimension_numbers = #tpu.dot_dimension_numbers<[1], [0], [0], [1], [0, 0, 1, 1], [], []>} : vector<8x32xf32>, vector<32x128xf32>, vector<8x128xf32> -> vector<8x128xf32>
    %c0_58 = arith.constant 0 : index
    %c0_59 = arith.constant 0 : index
    %c0_60 = arith.constant 0 : index
    %126 = vector.load %arg12[%c0_58, %c0_59, %c0_60] : memref<2x1x128xf32, #tpu.memory_space<vmem>>, vector<1x1x128xf32>
    %127 = vector.shape_cast %126 : vector<1x1x128xf32> to vector<1x128xf32>
    %128 = vector.broadcast %127 : vector<1x128xf32> to vector<8x128xf32>
    %129 = arith.addf %125, %128 : vector<8x128xf32>
    %cst_61 = arith.constant 0.000000e+00 : f32
    %130 = vector.broadcast %cst_61 : f32 to vector<8x128xf32>
    %131 = arith.maximumf %129, %130 : vector<8x128xf32>
    %c0_62 = arith.constant 0 : index
    %c0_63 = arith.constant 0 : index
    %c0_64 = arith.constant 0 : index
    %132 = vector.load %arg13[%c0_62, %c0_63, %c0_64] : memref<2x128x32xf32, #tpu.memory_space<vmem>>, vector<1x128x32xf32>
    %133 = vector.shape_cast %132 : vector<1x128x32xf32> to vector<128x32xf32>
    %cst_65 = arith.constant dense<0.000000e+00> : vector<8x32xf32>
    %134 = tpu.matmul %131, %133, %cst_65 {dimension_numbers = #tpu.dot_dimension_numbers<[1], [0], [0], [1], [0, 0, 1, 1], [], []>} : vector<8x128xf32>, vector<128x32xf32>, vector<8x32xf32> -> vector<8x32xf32>
    %c0_66 = arith.constant 0 : index
    %c0_67 = arith.constant 0 : index
    %c0_68 = arith.constant 0 : index
    %135 = vector.load %arg14[%c0_66, %c0_67, %c0_68] : memref<2x1x32xf32, #tpu.memory_space<vmem>>, vector<1x1x32xf32>
    %136 = vector.shape_cast %135 : vector<1x1x32xf32> to vector<1x32xf32>
    %137 = vector.broadcast %136 : vector<1x32xf32> to vector<8x32xf32>
    %138 = arith.addf %134, %137 : vector<8x32xf32>
    %139 = arith.addf %122, %138 : vector<8x32xf32>
    %c0_69 = arith.constant 0 : index
    %c0_70 = arith.constant 0 : index
    %c0_71 = arith.constant 0 : index
    %140 = vector.load %arg15[%c0_69, %c0_70, %c0_71] : memref<2x1x32xf32, #tpu.memory_space<vmem>>, vector<1x1x32xf32>
    %141 = vector.shape_cast %140 : vector<1x1x32xf32> to vector<1x32xf32>
    %c0_72 = arith.constant 0 : index
    %c0_73 = arith.constant 0 : index
    %c0_74 = arith.constant 0 : index
    %142 = vector.load %arg16[%c0_72, %c0_73, %c0_74] : memref<2x1x32xf32, #tpu.memory_space<vmem>>, vector<1x1x32xf32>
    %143 = vector.shape_cast %142 : vector<1x1x32xf32> to vector<1x32xf32>
    %cst_75 = arith.constant dense<0.000000e+00> : vector<8xf32>
    %144 = vector.multi_reduction <add>, %139, %cst_75 [1] : vector<8x32xf32> to vector<8xf32>
    %145 = vector.shape_cast %144 : vector<8xf32> to vector<8x1xf32>
    %cst_76 = arith.constant 3.200000e+01 : f32
    %146 = vector.broadcast %cst_76 : f32 to vector<8x1xf32>
    %147 = arith.divf %145, %146 : vector<8x1xf32>
    %148 = vector.broadcast %147 : vector<8x1xf32> to vector<8x32xf32>
    %149 = arith.subf %139, %148 : vector<8x32xf32>
    %150 = arith.mulf %149, %149 : vector<8x32xf32>
    %cst_77 = arith.constant dense<0.000000e+00> : vector<8xf32>
    %151 = vector.multi_reduction <add>, %150, %cst_77 [1] : vector<8x32xf32> to vector<8xf32>
    %152 = vector.shape_cast %151 : vector<8xf32> to vector<8x1xf32>
    %cst_78 = arith.constant 3.200000e+01 : f32
    %153 = vector.broadcast %cst_78 : f32 to vector<8x1xf32>
    %154 = arith.divf %152, %153 : vector<8x1xf32>
    %155 = vector.broadcast %147 : vector<8x1xf32> to vector<8x32xf32>
    %156 = arith.subf %139, %155 : vector<8x32xf32>
    %cst_79 = arith.constant 9.99999974E-6 : f32
    %157 = vector.broadcast %cst_79 : f32 to vector<8x1xf32>
    %158 = arith.addf %154, %157 : vector<8x1xf32>
    %159 = math.rsqrt %158 : vector<8x1xf32>
    %160 = vector.broadcast %159 : vector<8x1xf32> to vector<8x32xf32>
    %161 = arith.mulf %156, %160 : vector<8x32xf32>
    %162 = vector.broadcast %141 : vector<1x32xf32> to vector<8x32xf32>
    %163 = arith.mulf %161, %162 : vector<8x32xf32>
    %164 = vector.broadcast %143 : vector<1x32xf32> to vector<8x32xf32>
    %165 = arith.addf %163, %164 : vector<8x32xf32>
    %c1 = arith.constant 1 : index
    %c0_80 = arith.constant 0 : index
    %c0_81 = arith.constant 0 : index
    %166 = vector.load %arg5[%c1, %c0_80, %c0_81] : memref<2x32x96xf32, #tpu.memory_space<vmem>>, vector<1x32x96xf32>
    %167 = vector.shape_cast %166 : vector<1x32x96xf32> to vector<32x96xf32>
    %cst_82 = arith.constant dense<0.000000e+00> : vector<8x96xf32>
    %168 = tpu.matmul %165, %167, %cst_82 {dimension_numbers = #tpu.dot_dimension_numbers<[1], [0], [0], [1], [0, 0, 1, 1], [], []>} : vector<8x32xf32>, vector<32x96xf32>, vector<8x96xf32> -> vector<8x96xf32>
    %c1_83 = arith.constant 1 : index
    %c0_84 = arith.constant 0 : index
    %c0_85 = arith.constant 0 : index
    %169 = vector.load %arg6[%c1_83, %c0_84, %c0_85] : memref<2x1x96xf32, #tpu.memory_space<vmem>>, vector<1x1x96xf32>
    %170 = vector.shape_cast %169 : vector<1x1x96xf32> to vector<1x96xf32>
    %171 = vector.broadcast %170 : vector<1x96xf32> to vector<8x96xf32>
    %172 = arith.addf %168, %171 : vector<8x96xf32>
    %173 = vector.extract_strided_slice %172 {offsets = [0, 0], sizes = [8, 32], strides = [1, 1]} : vector<8x96xf32> to vector<8x32xf32>
    %cst_86 = arith.constant 0.353553385 : f32
    %174 = vector.broadcast %cst_86 : f32 to vector<8x32xf32>
    %175 = arith.mulf %173, %174 : vector<8x32xf32>
    %176 = vector.extract_strided_slice %172 {offsets = [0, 32], sizes = [8, 32], strides = [1, 1]} : vector<8x96xf32> to vector<8x32xf32>
    %177 = vector.extract_strided_slice %172 {offsets = [0, 64], sizes = [8, 32], strides = [1, 1]} : vector<8x96xf32> to vector<8x32xf32>
    %c1_87 = arith.constant 1 : index
    %c0_88 = arith.constant 0 : index
    %c0_89 = arith.constant 0 : index
    %178 = vector.load %arg7[%c1_87, %c0_88, %c0_89] : memref<2x32x32xf32, #tpu.memory_space<vmem>>, vector<1x32x32xf32>
    %179 = vector.shape_cast %178 : vector<1x32x32xf32> to vector<32x32xf32>
    %cst_90 = arith.constant 0.000000e+00 : f32
    %180 = vector.broadcast %cst_90 : f32 to vector<8x32xf32>
    %181 = vector.extract_strided_slice %175 {offsets = [0, 0], sizes = [8, 8], strides = [1, 1]} : vector<8x32xf32> to vector<8x8xf32>
    %182 = vector.extract_strided_slice %176 {offsets = [0, 0], sizes = [8, 8], strides = [1, 1]} : vector<8x32xf32> to vector<8x8xf32>
    %cst_91 = arith.constant dense<0.000000e+00> : vector<8x8xf32>
    %183 = tpu.matmul %181, %182, %cst_91 {dimension_numbers = #tpu.dot_dimension_numbers<[1], [1], [0], [0], [0, 0, 1, 0], [], []>} : vector<8x8xf32>, vector<8x8xf32>, vector<8x8xf32> -> vector<8x8xf32>
    %cst_92 = arith.constant dense<0xFF800000> : vector<8xf32>
    %184 = vector.multi_reduction <maximumf>, %183, %cst_92 [1] : vector<8x8xf32> to vector<8xf32>
    %185 = vector.shape_cast %184 : vector<8xf32> to vector<8x1xf32>
    %186 = vector.broadcast %185 : vector<8x1xf32> to vector<8x8xf32>
    %187 = arith.subf %183, %186 : vector<8x8xf32>
    %188 = math.exp %187 : vector<8x8xf32>
    %cst_93 = arith.constant dense<0.000000e+00> : vector<8xf32>
    %189 = vector.multi_reduction <add>, %188, %cst_93 [1] : vector<8x8xf32> to vector<8xf32>
    %190 = vector.shape_cast %189 : vector<8xf32> to vector<8x1xf32>
    %191 = vector.broadcast %190 : vector<8x1xf32> to vector<8x8xf32>
    %192 = arith.divf %188, %191 : vector<8x8xf32>
    %193 = vector.extract_strided_slice %177 {offsets = [0, 0], sizes = [8, 8], strides = [1, 1]} : vector<8x32xf32> to vector<8x8xf32>
    %cst_94 = arith.constant dense<0.000000e+00> : vector<8x8xf32>
    %194 = tpu.matmul %192, %193, %cst_94 {dimension_numbers = #tpu.dot_dimension_numbers<[1], [0], [0], [1], [0, 0, 1, 1], [], []>} : vector<8x8xf32>, vector<8x8xf32>, vector<8x8xf32> -> vector<8x8xf32>
    %195 = vector.extract_strided_slice %179 {offsets = [0, 0], sizes = [8, 32], strides = [1, 1]} : vector<32x32xf32> to vector<8x32xf32>
    %cst_95 = arith.constant dense<0.000000e+00> : vector<8x32xf32>
    %196 = tpu.matmul %194, %195, %cst_95 {dimension_numbers = #tpu.dot_dimension_numbers<[1], [0], [0], [1], [0, 0, 1, 1], [], []>} : vector<8x8xf32>, vector<8x32xf32>, vector<8x32xf32> -> vector<8x32xf32>
    %197 = arith.addf %180, %196 : vector<8x32xf32>
    %198 = vector.extract_strided_slice %175 {offsets = [0, 8], sizes = [8, 8], strides = [1, 1]} : vector<8x32xf32> to vector<8x8xf32>
    %199 = vector.extract_strided_slice %176 {offsets = [0, 8], sizes = [8, 8], strides = [1, 1]} : vector<8x32xf32> to vector<8x8xf32>
    %cst_96 = arith.constant dense<0.000000e+00> : vector<8x8xf32>
    %200 = tpu.matmul %198, %199, %cst_96 {dimension_numbers = #tpu.dot_dimension_numbers<[1], [1], [0], [0], [0, 0, 1, 0], [], []>} : vector<8x8xf32>, vector<8x8xf32>, vector<8x8xf32> -> vector<8x8xf32>
    %cst_97 = arith.constant dense<0xFF800000> : vector<8xf32>
    %201 = vector.multi_reduction <maximumf>, %200, %cst_97 [1] : vector<8x8xf32> to vector<8xf32>
    %202 = vector.shape_cast %201 : vector<8xf32> to vector<8x1xf32>
    %203 = vector.broadcast %202 : vector<8x1xf32> to vector<8x8xf32>
    %204 = arith.subf %200, %203 : vector<8x8xf32>
    %205 = math.exp %204 : vector<8x8xf32>
    %cst_98 = arith.constant dense<0.000000e+00> : vector<8xf32>
    %206 = vector.multi_reduction <add>, %205, %cst_98 [1] : vector<8x8xf32> to vector<8xf32>
    %207 = vector.shape_cast %206 : vector<8xf32> to vector<8x1xf32>
    %208 = vector.broadcast %207 : vector<8x1xf32> to vector<8x8xf32>
    %209 = arith.divf %205, %208 : vector<8x8xf32>
    %210 = vector.extract_strided_slice %177 {offsets = [0, 8], sizes = [8, 8], strides = [1, 1]} : vector<8x32xf32> to vector<8x8xf32>
    %cst_99 = arith.constant dense<0.000000e+00> : vector<8x8xf32>
    %211 = tpu.matmul %209, %210, %cst_99 {dimension_numbers = #tpu.dot_dimension_numbers<[1], [0], [0], [1], [0, 0, 1, 1], [], []>} : vector<8x8xf32>, vector<8x8xf32>, vector<8x8xf32> -> vector<8x8xf32>
    %212 = vector.extract_strided_slice %179 {offsets = [8, 0], sizes = [8, 32], strides = [1, 1]} : vector<32x32xf32> to vector<8x32xf32>
    %cst_100 = arith.constant dense<0.000000e+00> : vector<8x32xf32>
    %213 = tpu.matmul %211, %212, %cst_100 {dimension_numbers = #tpu.dot_dimension_numbers<[1], [0], [0], [1], [0, 0, 1, 1], [], []>} : vector<8x8xf32>, vector<8x32xf32>, vector<8x32xf32> -> vector<8x32xf32>
    %214 = arith.addf %197, %213 : vector<8x32xf32>
    %215 = vector.extract_strided_slice %175 {offsets = [0, 16], sizes = [8, 8], strides = [1, 1]} : vector<8x32xf32> to vector<8x8xf32>
    %216 = vector.extract_strided_slice %176 {offsets = [0, 16], sizes = [8, 8], strides = [1, 1]} : vector<8x32xf32> to vector<8x8xf32>
    %cst_101 = arith.constant dense<0.000000e+00> : vector<8x8xf32>
    %217 = tpu.matmul %215, %216, %cst_101 {dimension_numbers = #tpu.dot_dimension_numbers<[1], [1], [0], [0], [0, 0, 1, 0], [], []>} : vector<8x8xf32>, vector<8x8xf32>, vector<8x8xf32> -> vector<8x8xf32>
    %cst_102 = arith.constant dense<0xFF800000> : vector<8xf32>
    %218 = vector.multi_reduction <maximumf>, %217, %cst_102 [1] : vector<8x8xf32> to vector<8xf32>
    %219 = vector.shape_cast %218 : vector<8xf32> to vector<8x1xf32>
    %220 = vector.broadcast %219 : vector<8x1xf32> to vector<8x8xf32>
    %221 = arith.subf %217, %220 : vector<8x8xf32>
    %222 = math.exp %221 : vector<8x8xf32>
    %cst_103 = arith.constant dense<0.000000e+00> : vector<8xf32>
    %223 = vector.multi_reduction <add>, %222, %cst_103 [1] : vector<8x8xf32> to vector<8xf32>
    %224 = vector.shape_cast %223 : vector<8xf32> to vector<8x1xf32>
    %225 = vector.broadcast %224 : vector<8x1xf32> to vector<8x8xf32>
    %226 = arith.divf %222, %225 : vector<8x8xf32>
    %227 = vector.extract_strided_slice %177 {offsets = [0, 16], sizes = [8, 8], strides = [1, 1]} : vector<8x32xf32> to vector<8x8xf32>
    %cst_104 = arith.constant dense<0.000000e+00> : vector<8x8xf32>
    %228 = tpu.matmul %226, %227, %cst_104 {dimension_numbers = #tpu.dot_dimension_numbers<[1], [0], [0], [1], [0, 0, 1, 1], [], []>} : vector<8x8xf32>, vector<8x8xf32>, vector<8x8xf32> -> vector<8x8xf32>
    %229 = vector.extract_strided_slice %179 {offsets = [16, 0], sizes = [8, 32], strides = [1, 1]} : vector<32x32xf32> to vector<8x32xf32>
    %cst_105 = arith.constant dense<0.000000e+00> : vector<8x32xf32>
    %230 = tpu.matmul %228, %229, %cst_105 {dimension_numbers = #tpu.dot_dimension_numbers<[1], [0], [0], [1], [0, 0, 1, 1], [], []>} : vector<8x8xf32>, vector<8x32xf32>, vector<8x32xf32> -> vector<8x32xf32>
    %231 = arith.addf %214, %230 : vector<8x32xf32>
    %232 = vector.extract_strided_slice %175 {offsets = [0, 24], sizes = [8, 8], strides = [1, 1]} : vector<8x32xf32> to vector<8x8xf32>
    %233 = vector.extract_strided_slice %176 {offsets = [0, 24], sizes = [8, 8], strides = [1, 1]} : vector<8x32xf32> to vector<8x8xf32>
    %cst_106 = arith.constant dense<0.000000e+00> : vector<8x8xf32>
    %234 = tpu.matmul %232, %233, %cst_106 {dimension_numbers = #tpu.dot_dimension_numbers<[1], [1], [0], [0], [0, 0, 1, 0], [], []>} : vector<8x8xf32>, vector<8x8xf32>, vector<8x8xf32> -> vector<8x8xf32>
    %cst_107 = arith.constant dense<0xFF800000> : vector<8xf32>
    %235 = vector.multi_reduction <maximumf>, %234, %cst_107 [1] : vector<8x8xf32> to vector<8xf32>
    %236 = vector.shape_cast %235 : vector<8xf32> to vector<8x1xf32>
    %237 = vector.broadcast %236 : vector<8x1xf32> to vector<8x8xf32>
    %238 = arith.subf %234, %237 : vector<8x8xf32>
    %239 = math.exp %238 : vector<8x8xf32>
    %cst_108 = arith.constant dense<0.000000e+00> : vector<8xf32>
    %240 = vector.multi_reduction <add>, %239, %cst_108 [1] : vector<8x8xf32> to vector<8xf32>
    %241 = vector.shape_cast %240 : vector<8xf32> to vector<8x1xf32>
    %242 = vector.broadcast %241 : vector<8x1xf32> to vector<8x8xf32>
    %243 = arith.divf %239, %242 : vector<8x8xf32>
    %244 = vector.extract_strided_slice %177 {offsets = [0, 24], sizes = [8, 8], strides = [1, 1]} : vector<8x32xf32> to vector<8x8xf32>
    %cst_109 = arith.constant dense<0.000000e+00> : vector<8x8xf32>
    %245 = tpu.matmul %243, %244, %cst_109 {dimension_numbers = #tpu.dot_dimension_numbers<[1], [0], [0], [1], [0, 0, 1, 1], [], []>} : vector<8x8xf32>, vector<8x8xf32>, vector<8x8xf32> -> vector<8x8xf32>
    %246 = vector.extract_strided_slice %179 {offsets = [24, 0], sizes = [8, 32], strides = [1, 1]} : vector<32x32xf32> to vector<8x32xf32>
    %cst_110 = arith.constant dense<0.000000e+00> : vector<8x32xf32>
    %247 = tpu.matmul %245, %246, %cst_110 {dimension_numbers = #tpu.dot_dimension_numbers<[1], [0], [0], [1], [0, 0, 1, 1], [], []>} : vector<8x8xf32>, vector<8x32xf32>, vector<8x32xf32> -> vector<8x32xf32>
    %248 = arith.addf %231, %247 : vector<8x32xf32>
    %c1_111 = arith.constant 1 : index
    %c0_112 = arith.constant 0 : index
    %c0_113 = arith.constant 0 : index
    %249 = vector.load %arg8[%c1_111, %c0_112, %c0_113] : memref<2x1x32xf32, #tpu.memory_space<vmem>>, vector<1x1x32xf32>
    %250 = vector.shape_cast %249 : vector<1x1x32xf32> to vector<1x32xf32>
    %251 = vector.broadcast %250 : vector<1x32xf32> to vector<8x32xf32>
    %252 = arith.addf %248, %251 : vector<8x32xf32>
    %253 = arith.addf %165, %252 : vector<8x32xf32>
    %c1_114 = arith.constant 1 : index
    %c0_115 = arith.constant 0 : index
    %c0_116 = arith.constant 0 : index
    %254 = vector.load %arg9[%c1_114, %c0_115, %c0_116] : memref<2x1x32xf32, #tpu.memory_space<vmem>>, vector<1x1x32xf32>
    %255 = vector.shape_cast %254 : vector<1x1x32xf32> to vector<1x32xf32>
    %c1_117 = arith.constant 1 : index
    %c0_118 = arith.constant 0 : index
    %c0_119 = arith.constant 0 : index
    %256 = vector.load %arg10[%c1_117, %c0_118, %c0_119] : memref<2x1x32xf32, #tpu.memory_space<vmem>>, vector<1x1x32xf32>
    %257 = vector.shape_cast %256 : vector<1x1x32xf32> to vector<1x32xf32>
    %cst_120 = arith.constant dense<0.000000e+00> : vector<8xf32>
    %258 = vector.multi_reduction <add>, %253, %cst_120 [1] : vector<8x32xf32> to vector<8xf32>
    %259 = vector.shape_cast %258 : vector<8xf32> to vector<8x1xf32>
    %cst_121 = arith.constant 3.200000e+01 : f32
    %260 = vector.broadcast %cst_121 : f32 to vector<8x1xf32>
    %261 = arith.divf %259, %260 : vector<8x1xf32>
    %262 = vector.broadcast %261 : vector<8x1xf32> to vector<8x32xf32>
    %263 = arith.subf %253, %262 : vector<8x32xf32>
    %264 = arith.mulf %263, %263 : vector<8x32xf32>
    %cst_122 = arith.constant dense<0.000000e+00> : vector<8xf32>
    %265 = vector.multi_reduction <add>, %264, %cst_122 [1] : vector<8x32xf32> to vector<8xf32>
    %266 = vector.shape_cast %265 : vector<8xf32> to vector<8x1xf32>
    %cst_123 = arith.constant 3.200000e+01 : f32
    %267 = vector.broadcast %cst_123 : f32 to vector<8x1xf32>
    %268 = arith.divf %266, %267 : vector<8x1xf32>
    %269 = vector.broadcast %261 : vector<8x1xf32> to vector<8x32xf32>
    %270 = arith.subf %253, %269 : vector<8x32xf32>
    %cst_124 = arith.constant 9.99999974E-6 : f32
    %271 = vector.broadcast %cst_124 : f32 to vector<8x1xf32>
    %272 = arith.addf %268, %271 : vector<8x1xf32>
    %273 = math.rsqrt %272 : vector<8x1xf32>
    %274 = vector.broadcast %273 : vector<8x1xf32> to vector<8x32xf32>
    %275 = arith.mulf %270, %274 : vector<8x32xf32>
    %276 = vector.broadcast %255 : vector<1x32xf32> to vector<8x32xf32>
    %277 = arith.mulf %275, %276 : vector<8x32xf32>
    %278 = vector.broadcast %257 : vector<1x32xf32> to vector<8x32xf32>
    %279 = arith.addf %277, %278 : vector<8x32xf32>
    %c1_125 = arith.constant 1 : index
    %c0_126 = arith.constant 0 : index
    %c0_127 = arith.constant 0 : index
    %280 = vector.load %arg11[%c1_125, %c0_126, %c0_127] : memref<2x32x128xf32, #tpu.memory_space<vmem>>, vector<1x32x128xf32>
    %281 = vector.shape_cast %280 : vector<1x32x128xf32> to vector<32x128xf32>
    %cst_128 = arith.constant dense<0.000000e+00> : vector<8x128xf32>
    %282 = tpu.matmul %279, %281, %cst_128 {dimension_numbers = #tpu.dot_dimension_numbers<[1], [0], [0], [1], [0, 0, 1, 1], [], []>} : vector<8x32xf32>, vector<32x128xf32>, vector<8x128xf32> -> vector<8x128xf32>
    %c1_129 = arith.constant 1 : index
    %c0_130 = arith.constant 0 : index
    %c0_131 = arith.constant 0 : index
    %283 = vector.load %arg12[%c1_129, %c0_130, %c0_131] : memref<2x1x128xf32, #tpu.memory_space<vmem>>, vector<1x1x128xf32>
    %284 = vector.shape_cast %283 : vector<1x1x128xf32> to vector<1x128xf32>
    %285 = vector.broadcast %284 : vector<1x128xf32> to vector<8x128xf32>
    %286 = arith.addf %282, %285 : vector<8x128xf32>
    %cst_132 = arith.constant 0.000000e+00 : f32
    %287 = vector.broadcast %cst_132 : f32 to vector<8x128xf32>
    %288 = arith.maximumf %286, %287 : vector<8x128xf32>
    %c1_133 = arith.constant 1 : index
    %c0_134 = arith.constant 0 : index
    %c0_135 = arith.constant 0 : index
    %289 = vector.load %arg13[%c1_133, %c0_134, %c0_135] : memref<2x128x32xf32, #tpu.memory_space<vmem>>, vector<1x128x32xf32>
    %290 = vector.shape_cast %289 : vector<1x128x32xf32> to vector<128x32xf32>
    %cst_136 = arith.constant dense<0.000000e+00> : vector<8x32xf32>
    %291 = tpu.matmul %288, %290, %cst_136 {dimension_numbers = #tpu.dot_dimension_numbers<[1], [0], [0], [1], [0, 0, 1, 1], [], []>} : vector<8x128xf32>, vector<128x32xf32>, vector<8x32xf32> -> vector<8x32xf32>
    %c1_137 = arith.constant 1 : index
    %c0_138 = arith.constant 0 : index
    %c0_139 = arith.constant 0 : index
    %292 = vector.load %arg14[%c1_137, %c0_138, %c0_139] : memref<2x1x32xf32, #tpu.memory_space<vmem>>, vector<1x1x32xf32>
    %293 = vector.shape_cast %292 : vector<1x1x32xf32> to vector<1x32xf32>
    %294 = vector.broadcast %293 : vector<1x32xf32> to vector<8x32xf32>
    %295 = arith.addf %291, %294 : vector<8x32xf32>
    %296 = arith.addf %279, %295 : vector<8x32xf32>
    %c1_140 = arith.constant 1 : index
    %c0_141 = arith.constant 0 : index
    %c0_142 = arith.constant 0 : index
    %297 = vector.load %arg15[%c1_140, %c0_141, %c0_142] : memref<2x1x32xf32, #tpu.memory_space<vmem>>, vector<1x1x32xf32>
    %298 = vector.shape_cast %297 : vector<1x1x32xf32> to vector<1x32xf32>
    %c1_143 = arith.constant 1 : index
    %c0_144 = arith.constant 0 : index
    %c0_145 = arith.constant 0 : index
    %299 = vector.load %arg16[%c1_143, %c0_144, %c0_145] : memref<2x1x32xf32, #tpu.memory_space<vmem>>, vector<1x1x32xf32>
    %300 = vector.shape_cast %299 : vector<1x1x32xf32> to vector<1x32xf32>
    %cst_146 = arith.constant dense<0.000000e+00> : vector<8xf32>
    %301 = vector.multi_reduction <add>, %296, %cst_146 [1] : vector<8x32xf32> to vector<8xf32>
    %302 = vector.shape_cast %301 : vector<8xf32> to vector<8x1xf32>
    %cst_147 = arith.constant 3.200000e+01 : f32
    %303 = vector.broadcast %cst_147 : f32 to vector<8x1xf32>
    %304 = arith.divf %302, %303 : vector<8x1xf32>
    %305 = vector.broadcast %304 : vector<8x1xf32> to vector<8x32xf32>
    %306 = arith.subf %296, %305 : vector<8x32xf32>
    %307 = arith.mulf %306, %306 : vector<8x32xf32>
    %cst_148 = arith.constant dense<0.000000e+00> : vector<8xf32>
    %308 = vector.multi_reduction <add>, %307, %cst_148 [1] : vector<8x32xf32> to vector<8xf32>
    %309 = vector.shape_cast %308 : vector<8xf32> to vector<8x1xf32>
    %cst_149 = arith.constant 3.200000e+01 : f32
    %310 = vector.broadcast %cst_149 : f32 to vector<8x1xf32>
    %311 = arith.divf %309, %310 : vector<8x1xf32>
    %312 = vector.broadcast %304 : vector<8x1xf32> to vector<8x32xf32>
    %313 = arith.subf %296, %312 : vector<8x32xf32>
    %cst_150 = arith.constant 9.99999974E-6 : f32
    %314 = vector.broadcast %cst_150 : f32 to vector<8x1xf32>
    %315 = arith.addf %311, %314 : vector<8x1xf32>
    %316 = math.rsqrt %315 : vector<8x1xf32>
    %317 = vector.broadcast %316 : vector<8x1xf32> to vector<8x32xf32>
    %318 = arith.mulf %313, %317 : vector<8x32xf32>
    %319 = vector.broadcast %298 : vector<1x32xf32> to vector<8x32xf32>
    %320 = arith.mulf %318, %319 : vector<8x32xf32>
    %321 = vector.broadcast %300 : vector<1x32xf32> to vector<8x32xf32>
    %322 = arith.addf %320, %321 : vector<8x32xf32>
    %323 = arith.addf %322, %6 : vector<8x32xf32>
    %cst_151 = arith.constant 0.000000e+00 : f32
    %324 = vector.broadcast %cst_151 : f32 to vector<8x32xf32>
    %325 = arith.maximumf %323, %324 : vector<8x32xf32>
    %c0_152 = arith.constant 0 : index
    %c0_153 = arith.constant 0 : index
    %326 = vector.load %arg17[%c0_152, %c0_153] : memref<32x64xf32, #tpu.memory_space<vmem>>, vector<32x64xf32>
    %cst_154 = arith.constant dense<0.000000e+00> : vector<8x64xf32>
    %327 = tpu.matmul %325, %326, %cst_154 {dimension_numbers = #tpu.dot_dimension_numbers<[1], [0], [0], [1], [0, 0, 1, 1], [], []>} : vector<8x32xf32>, vector<32x64xf32>, vector<8x64xf32> -> vector<8x64xf32>
    %c0_155 = arith.constant 0 : index
    %c0_156 = arith.constant 0 : index
    %328 = vector.load %arg18[%c0_155, %c0_156] : memref<1x64xf32, #tpu.memory_space<vmem>>, vector<1x64xf32>
    %329 = vector.broadcast %328 : vector<1x64xf32> to vector<8x64xf32>
    %330 = arith.addf %327, %329 : vector<8x64xf32>
    %cst_157 = arith.constant 0.000000e+00 : f32
    %331 = vector.broadcast %cst_157 : f32 to vector<8x64xf32>
    %332 = arith.maximumf %330, %331 : vector<8x64xf32>
    %c0_158 = arith.constant 0 : index
    %c0_159 = arith.constant 0 : index
    %333 = vector.load %arg19[%c0_158, %c0_159] : memref<64x4xf32, #tpu.memory_space<vmem>>, vector<64x4xf32>
    %cst_160 = arith.constant dense<0.000000e+00> : vector<8x4xf32>
    %334 = tpu.matmul %332, %333, %cst_160 {dimension_numbers = #tpu.dot_dimension_numbers<[1], [0], [0], [1], [0, 0, 1, 1], [], []>} : vector<8x64xf32>, vector<64x4xf32>, vector<8x4xf32> -> vector<8x4xf32>
    %c0_161 = arith.constant 0 : index
    %c0_162 = arith.constant 0 : index
    %335 = vector.load %arg20[%c0_161, %c0_162] : memref<1x4xf32, #tpu.memory_space<vmem>>, vector<1x4xf32>
    %336 = vector.broadcast %335 : vector<1x4xf32> to vector<8x4xf32>
    %337 = arith.addf %334, %336 : vector<8x4xf32>
    %c0_163 = arith.constant 0 : index
    %c0_164 = arith.constant 0 : index
    %338 = vector.load %arg21[%c0_163, %c0_164] : memref<8x4xf32, #tpu.memory_space<vmem>>, vector<8x4xf32>
    tpu.vector_store %arg21[%c0_163, %c0_164], %337 {strides = array<i32>} : memref<8x4xf32, #tpu.memory_space<vmem>>, vector<8x4xf32>,
    return
  }
  func.func @transform_0(%arg0: i32) -> (i32, i32, i32) {
    %c0_i32 = arith.constant 0 : i32
    %c0_i32_0 = arith.constant 0 : i32
    %c0_i32_1 = arith.constant 0 : i32
    return %arg0, %c0_i32, %c0_i32_0 : i32, i32, i32
  }
  func.func @transform_1(%arg0: i32) -> (i32, i32) {
    %c0_i32 = arith.constant 0 : i32
    %c0_i32_0 = arith.constant 0 : i32
    %c0_i32_1 = arith.constant 0 : i32
    return %c0_i32, %c0_i32_0 : i32, i32
  }
  func.func @transform_2(%arg0: i32) -> (i32, i32) {
    %c0_i32 = arith.constant 0 : i32
    %c0_i32_0 = arith.constant 0 : i32
    %c0_i32_1 = arith.constant 0 : i32
    return %c0_i32, %c0_i32_0 : i32, i32
  }
  func.func @transform_3(%arg0: i32) -> (i32, i32) {
    %c0_i32 = arith.constant 0 : i32
    %c0_i32_0 = arith.constant 0 : i32
    %c0_i32_1 = arith.constant 0 : i32
    return %c0_i32, %c0_i32_0 : i32, i32
  }
  func.func @transform_4(%arg0: i32) -> (i32, i32, i32) {
    %c0_i32 = arith.constant 0 : i32
    %c0_i32_0 = arith.constant 0 : i32
    %c0_i32_1 = arith.constant 0 : i32
    %c0_i32_2 = arith.constant 0 : i32
    return %c0_i32, %c0_i32_0, %c0_i32_1 : i32, i32, i32
  }
  func.func @transform_5(%arg0: i32) -> (i32, i32, i32) {
    %c0_i32 = arith.constant 0 : i32
    %c0_i32_0 = arith.constant 0 : i32
    %c0_i32_1 = arith.constant 0 : i32
    %c0_i32_2 = arith.constant 0 : i32
    return %c0_i32, %c0_i32_0, %c0_i32_1 : i32, i32, i32
  }
  func.func @transform_6(%arg0: i32) -> (i32, i32, i32) {
    %c0_i32 = arith.constant 0 : i32
    %c0_i32_0 = arith.constant 0 : i32
    %c0_i32_1 = arith.constant 0 : i32
    %c0_i32_2 = arith.constant 0 : i32
    return %c0_i32, %c0_i32_0, %c0_i32_1 : i32, i32, i32
  }
  func.func @transform_7(%arg0: i32) -> (i32, i32, i32) {
    %c0_i32 = arith.constant 0 : i32
    %c0_i32_0 = arith.constant 0 : i32
    %c0_i32_1 = arith.constant 0 : i32
    %c0_i32_2 = arith.constant 0 : i32
    return %c0_i32, %c0_i32_0, %c0_i32_1 : i32, i32, i32
  }
  func.func @transform_8(%arg0: i32) -> (i32, i32, i32) {
    %c0_i32 = arith.constant 0 : i32
    %c0_i32_0 = arith.constant 0 : i32
    %c0_i32_1 = arith.constant 0 : i32
    %c0_i32_2 = arith.constant 0 : i32
    return %c0_i32, %c0_i32_0, %c0_i32_1 : i32, i32, i32
  }
  func.func @transform_9(%arg0: i32) -> (i32, i32, i32) {
    %c0_i32 = arith.constant 0 : i32
    %c0_i32_0 = arith.constant 0 : i32
    %c0_i32_1 = arith.constant 0 : i32
    %c0_i32_2 = arith.constant 0 : i32
    return %c0_i32, %c0_i32_0, %c0_i32_1 : i32, i32, i32
  }
  func.func @transform_10(%arg0: i32) -> (i32, i32, i32) {
    %c0_i32 = arith.constant 0 : i32
    %c0_i32_0 = arith.constant 0 : i32
    %c0_i32_1 = arith.constant 0 : i32
    %c0_i32_2 = arith.constant 0 : i32
    return %c0_i32, %c0_i32_0, %c0_i32_1 : i32, i32, i32
  }
  func.func @transform_11(%arg0: i32) -> (i32, i32, i32) {
    %c0_i32 = arith.constant 0 : i32
    %c0_i32_0 = arith.constant 0 : i32
    %c0_i32_1 = arith.constant 0 : i32
    %c0_i32_2 = arith.constant 0 : i32
    return %c0_i32, %c0_i32_0, %c0_i32_1 : i32, i32, i32
  }
  func.func @transform_12(%arg0: i32) -> (i32, i32, i32) {
    %c0_i32 = arith.constant 0 : i32
    %c0_i32_0 = arith.constant 0 : i32
    %c0_i32_1 = arith.constant 0 : i32
    %c0_i32_2 = arith.constant 0 : i32
    return %c0_i32, %c0_i32_0, %c0_i32_1 : i32, i32, i32
  }
  func.func @transform_13(%arg0: i32) -> (i32, i32, i32) {
    %c0_i32 = arith.constant 0 : i32
    %c0_i32_0 = arith.constant 0 : i32
    %c0_i32_1 = arith.constant 0 : i32
    %c0_i32_2 = arith.constant 0 : i32
    return %c0_i32, %c0_i32_0, %c0_i32_1 : i32, i32, i32
  }
  func.func @transform_14(%arg0: i32) -> (i32, i32, i32) {
    %c0_i32 = arith.constant 0 : i32
    %c0_i32_0 = arith.constant 0 : i32
    %c0_i32_1 = arith.constant 0 : i32
    %c0_i32_2 = arith.constant 0 : i32
    return %c0_i32, %c0_i32_0, %c0_i32_1 : i32, i32, i32
  }
  func.func @transform_15(%arg0: i32) -> (i32, i32, i32) {
    %c0_i32 = arith.constant 0 : i32
    %c0_i32_0 = arith.constant 0 : i32
    %c0_i32_1 = arith.constant 0 : i32
    %c0_i32_2 = arith.constant 0 : i32
    return %c0_i32, %c0_i32_0, %c0_i32_1 : i32, i32, i32
  }
  func.func @transform_16(%arg0: i32) -> (i32, i32) {
    %c0_i32 = arith.constant 0 : i32
    %c0_i32_0 = arith.constant 0 : i32
    %c0_i32_1 = arith.constant 0 : i32
    return %c0_i32, %c0_i32_0 : i32, i32
  }
  func.func @transform_17(%arg0: i32) -> (i32, i32) {
    %c0_i32 = arith.constant 0 : i32
    %c0_i32_0 = arith.constant 0 : i32
    %c0_i32_1 = arith.constant 0 : i32
    return %c0_i32, %c0_i32_0 : i32, i32
  }
  func.func @transform_18(%arg0: i32) -> (i32, i32) {
    %c0_i32 = arith.constant 0 : i32
    %c0_i32_0 = arith.constant 0 : i32
    %c0_i32_1 = arith.constant 0 : i32
    return %c0_i32, %c0_i32_0 : i32, i32
  }
  func.func @transform_19(%arg0: i32) -> (i32, i32) {
    %c0_i32 = arith.constant 0 : i32
    %c0_i32_0 = arith.constant 0 : i32
    %c0_i32_1 = arith.constant 0 : i32
    return %c0_i32, %c0_i32_0 : i32, i32
  }
  func.func @transform_20(%arg0: i32) -> (i32, i32) {
    %c0_i32 = arith.constant 0 : i32
    %c0_i32_0 = arith.constant 0 : i32
    return %arg0, %c0_i32 : i32, i32
  }
}

</mosaic_0001>

<bundles_post_ra>
// kernel: spec2label_forward.1
= control target key start
LH: loop header
LB: loop body
LE: loop exit
PB: predicated region body
PF: predicated region fallthrough
CT: control target
= control target key end

     0   :  { %s4854_s0 = inlined_call_operand.vmem [shape: f32[2,8,16], index: 0, kind: input, shape index: {}]   ;;  %s4855_s1 = inlined_call_operand.vmem [shape: f32[8,32], index: 1, kind: input, shape index: {}]   ;;  %s4856_s2 = inlined_call_operand.vmem [shape: f32[16,32], index: 2, kind: input, shape index: {}]   ;;  %s4857_s3 = inlined_call_operand.vmem [shape: f32[1,32], index: 3, kind: input, shape index: {}]   ;;  %s4858_s4 = inlined_call_operand.vmem [shape: f32[2,32,96], index: 4, kind: input, shape index: {}]   ;;  %s4859_s5 = inlined_call_operand.vmem [shape: f32[2,1,96], index: 5, kind: input, shape index: {}]   ;;  %s4860_s6 = inlined_call_operand.vmem [shape: f32[2,32,32], index: 6, kind: input, shape index: {}]   ;;  %s4861_s7 = inlined_call_operand.vmem [shape: f32[2,1,32], index: 7, kind: input, shape index: {}]   ;;  %s4862_s8 = inlined_call_operand.vmem [shape: f32[2,1,32], index: 8, kind: input, shape index: {}]   ;;  %s4863_s9 = inlined_call_operand.vmem [shape: f32[2,1,32], index: 9, kind: input, shape index: {}]   ;;  %s4864_s10 = inlined_call_operand.vmem [shape: f32[2,32,128], index: 10, kind: input, shape index: {}]   ;;  %s4865_s11 = inlined_call_operand.vmem [shape: f32[2,1,128], index: 11, kind: input, shape index: {}]   ;;  %s4866_s12 = inlined_call_operand.vmem [shape: f32[2,128,32], index: 12, kind: input, shape index: {}]   ;;  %s4867_s13 = inlined_call_operand.vmem [shape: f32[2,1,32], index: 13, kind: input, shape index: {}]   ;;  %s4868_s14 = inlined_call_operand.vmem [shape: f32[2,1,32], index: 14, kind: input, shape index: {}]   ;;  %s4869_s15 = inlined_call_operand.vmem [shape: f32[2,1,32], index: 15, kind: input, shape index: {}]   ;;  %s4870_s16 = inlined_call_operand.vmem [shape: f32[32,64], index: 16, kind: input, shape index: {}]   ;;  %s4871_s17 = inlined_call_operand.vmem [shape: f32[1,64], index: 17, kind: input, shape index: {}]   ;;  %s4872_s18 = inlined_call_operand.vmem [shape: f32[64,4], index: 18, kind: input, shape index: {}]   ;;  %s4873_s19 = inlined_call_operand.vmem [shape: f32[1,4], index: 19, kind: input, shape index: {}]   ;;  %s4874_s20 = inlined_call_operand.vmem [shape: f32[16,4], index: 20, kind: output, shape index: {}]  }
   0x1   :  { %4887 = sst [smem:[#allocation2_spill]] %s4854_s0 }
   0x2   :  { %4888 = sst [smem:[#allocation3_spill]] %s4855_s1  ;;  %s4310_s1 = smov 0  }
   0x3   :  { %4889 = sst [smem:[#allocation4_spill]] %s4856_s2 }
   0x4   :  { %4890 = sst [smem:[#allocation5_spill]] %s4857_s3 }
   0x5   :  { %4891 = sst [smem:[#allocation6_spill]] %s4858_s4 }
   0x6 LB: > { %s3535_s22 = sadd.s32 4294967295, %s4189_s1   ;;  %p3539_p0 = scmp.ge.s32.totalorder %s4189_s1, 1  ;;  %s4189_s1 = sphi %s4310_s1, %s30_s1  }
   0x7   : > { %p561_p1 = scmp.lt.s32.totalorder %s4189_s1, 3 }
   0x9   : > { %p562_p2 = pnand %p3539_p0, %p561_p1 }
   0xa   : > { %s4892_s2 = sld [smem:[#allocation4_spill]] (!%p562_p2)  ;;  %p617_p3 = scmp.lt.s32.totalorder (!%p562_p2), %s3535_s22, 1  ;;  %v4191_v2 = vmov (!%p562_p2), 0.0|0.0   ;;  %vm4192_vm0 = vmmov (!%p562_p2), 0   ;;  %v4193_v4 = vmov (!%p562_p2), 0.0   ;;  %vm635_vm1 = vcmask (!%p562_p2), 130048  }
   0xb   : > { %565 = sbr.rel (%p562_p2) target bundleno = 8443 (0x20fb), region = 100  ;;  %4028 = vmatprep.subr.bf16.mxu0 (!%p562_p2), %v4191_v2  ;;  %3761 = vmatprep.mubr.msk.f32.mxu0 (!%p562_p2), %vm4192_vm0, %v4193_v4  ;;  %s4893_s28 = sld [smem:[#allocation6_spill]] (!%p562_p2)  ;;  %vm722_vm2 = vcmask (!%p562_p2), 261120   ;;  %v3544_v18 = vld [vmem:[%s4859_s5] ss:$0 sm:$0xff] (!%p562_p2)  ;;  %vm804_vm3 = vcmask (!%p562_p2), 64512  }
   0xc   : > { %4031 = vmatprep.subr.bf16.mxu1 (!%p562_p2), %v4191_v2  ;;  %3772 = vmatprep.mubr.msk.f32.mxu1 (!%p562_p2), %vm4192_vm0, %v4193_v4  ;;  %s4894_s23 = sld [smem:[#allocation2_spill]] (!%p562_p2)  ;;  %s4895_s0 = sld [smem:[#allocation5_spill]] (!%p562_p2)  ;;  %v798_v42 = vld [vmem:[%s4860_s6 + $0x8] sm:$0xff] (!%p562_p2)  ;;  %v797_v51 = vld [vmem:[%s4860_s6] sm:$0xff] (!%p562_p2)  ;;  %vm3406_vm4 = vcmask (!%p562_p2), 523264   ;;  %vm3480_vm5 = vcmask (!%p562_p2), 31744  }
   0xd   : > { %s4194_s26 = smov (!%p562_p2), 96   ;;  %s4886_s27 = smov (!%p562_p2), 120  }
   0xe   : > { %s4885_s4 = smov (!%p562_p2), 88   ;;  %s4884_s29 = smov (!%p562_p2), 56  }
   0xf   : > { %s4882_s21 = smov (!%p562_p2), 80   ;;  %s4878_s25 = smov (!%p562_p2), 72  }
  0x10   : > { %v626_v0 = vld [vmem:[%s4892_s2] sm:$0xff] (!%p562_p2)  ;;  %v627_v1 = vld [vmem:[%s4892_s2 + $0x8] sm:$0xff] (!%p562_p2)  ;;  %s4879_s3 = smov (!%p562_p2), 104  }
  0x11   : > { %v4029_v3 = vpack.c.bf16 (!%p562_p2), %v627_v1, %v626_v0  ;;  %v711_v5 = vld [vmem:[%s4893_s28] sm:$0xff] (!%p562_p2)  ;;  %v712_v6 = vld [vmem:[%s4893_s28 + $0x8] sm:$0xff] (!%p562_p2)  ;;  %v713_v9 = vld [vmem:[%s4893_s28 + $0x10] sm:$0xff] (!%p562_p2) }
  0x12   : > { %s4908_s22 = smov (!%p617_p3, %s3535_s22), 1  ;;  %v4032_v7 = vpack.c.bf16 %v712_v6, %v711_v5  ;;  %v714_v10 = vld [vmem:[%s4893_s28 + $0x18] sm:$0xff]  ;;  %v3542_v12 = vld [vmem:[%s4895_s0] ss:$0 sm:$0xff]  ;;  %s4198_s0 = smov 64  }
  0x13   : > { %4030 = vmatpush3.bf16.msra.mxu0 %v4029_v3  ;;  %s4877_s30 = sshll.u32 %s4908_s22, 3  ;;  %v4035_v11 = vpack.c.bf16 %v714_v10, %v713_v9 }
  0x14   : > { %4033 = vmatpush3.bf16.msra.mxu1 %v4032_v7  ;;  %3775 = vmatprep.subr.mxu0 %v4193_v4  ;;  %s620_s24 = scalar_lea.vmem %s4894_s23, %s4877_s30  ;;  %s4883_s23 = smov 112  }
  0x15   : > { %4034 = vmatprep.subr.bf16.mxu1 %v4191_v2  ;;  %v625_v8 = vld [vmem:[%s620_s24] sm:$0xff]  ;;  %s4896_s24 = sld [smem:[#allocation3_spill]]  ;;  %s4899_s30 = smov 56  }
  0x16   : > { %3762 = vmatmul.mubr.msk.f32.vlgmr.msra.gmra.mrb[0].mxu0 %vm635_vm1, %v625_v8 }
  0x17   : > { %3777 = vmatprep.mubr.msk.f32.mxu0 %vm4192_vm0, %v4193_v4 }
  0x18   : > { %4036 = vmatpush3.bf16.msra.mxu1 %v4035_v11 }
  0x19   : > { %3785 = vmatprep.subr.mxu1 %v4193_v4 }
  0x1b   : > { %v709_v14 = vld [vmem:[%s4896_s24] sm:$0xff]  ;;  %s4881_s24 = smov 48  }
  0xe9   : > { %v705_v13 = vpop.f32.mrb[0].mxu0 }
  0xea   : > { %v4361_v15 = vadd.f32 %v3542_v12, %v705_v13  ;;  %v3763_v16 = vpop.f32.mrb[1].mxu0 }
  0xeb   : > { %v799_v16 = vld [vmem:[%s4860_s6 + $0x10] sm:$0xff] }
  0xec   : > { %v4364_v17 = vadd.f32 %v709_v14, %v4361_v15 }
  0xee   : > { %3773 = vmatmul.mubr.msk.f32.vlgmr.msra.gmra.mrb[0].mxu1 %vm722_vm2, %v4364_v17 }
  0xef   : > { %3787 = vmatprep.mubr.msk.f32.mxu1 %vm4192_vm0, %v4193_v4 }
 0x1c1   : > { %v792_v19 = vpop.f32.mrb[0].mxu1 }
 0x1c2   : > { %v4373_v20 = vadd.f32 %v3544_v18, %v792_v19  ;;  %v3774_v21 = vpop.f32.mrb[1].mxu1 }
 0x1c4   : > { %802 = vrot.lane.b32.xlu0 %v4373_v20, %s4194_s26  ;;  %v4378_v22 = vmul.f32 0.35355338, %v4373_v20 }
 0x1c6   : > { %967 = vrot.lane.b32.xlu1 %v4378_v22, %s4886_s27  ;;  %s4902_s27 = smov 48  }
 0x1c8   : > { %969 = vrot.lane.b32.xlu0 %v4373_v20, %s4885_s4 }
 0x236   : > { %v803_v23 = vpop.permute.xlu0 %802 }
 0x237   : > { %3776 = vmatpush3.xpose.msk.msra.mxu0 %vm804_vm3, %v803_v23 }
 0x238   : > { %3780 = vmatprep.subr.mxu0 %v4193_v4  ;;  %v968_v25 = vpop.permute.xlu1 %967 }
 0x23a   : > { %v970_v24 = vpop.permute.xlu0 %969  ;;  %3778 = vmatmul.mubr.msk.f32.vlgmr.msra.gmra.mrb[2].mxu0 %vm804_vm3, %v4378_v22 }
 0x23b   : > { %3786 = vmatpush3.xpose.msk.msra.mxu1 %vm804_vm3, %v970_v24  ;;  %3782 = vmatprep.mubr.msk.f32.mxu0 %vm4192_vm0, %v4193_v4 }
 0x23c   : > { %3795 = vmatprep.subr.mxu1 %v4193_v4 }
 0x23e   : > { %3788 = vmatmul.mubr.msk.f32.vlgmr.msra.gmra.mrb[2].mxu1 %vm804_vm3, %v968_v25 }
 0x23f   : > { %3797 = vmatprep.mubr.msk.f32.mxu1 %vm4192_vm0, %v4193_v4  ;;  %3796 = vmatpush3.msra.mxu1 %v798_v42 }
 0x240   : > { %3805 = vmatprep.subr.mxu1 %v4193_v4 }
 0x30d   : > { %v876_v26 = vpop.f32.mrb[2].mxu0 }
 0x30e   : > { %v3779_v27 = vpop.f32.mrb[3].mxu0  ;;  %v880_v28 = vsel %vm804_vm3, %v876_v26, -inf }
 0x30f   : > { %881 = vmax.xlane.f32.xlu1 %v880_v28 }
 0x311   : > { %v1041_v29 = vpop.f32.mrb[2].mxu1 }
 0x312   : > { %v3789_v30 = vpop.f32.mrb[3].mxu1  ;;  %v1045_v31 = vsel %vm804_vm3, %v1041_v29, -inf }
 0x313   : > { %1046 = vmax.xlane.f32.xlu0 %v1045_v31  ;;  %v800_v30 = vld [vmem:[%s4860_s6 + $0x18] sm:$0xff] }
 0x39c   : > { %v882_v32 = vpop.xlane.xlu1 %881 }
 0x39d   : > { %v883_v33 = vsub.f32 %v876_v26, %v882_v32 }
 0x39f   : > { %v884_v34 = vmul.f32 1.442695, %v883_v33 }
 0x3a0   : > { %v1047_v35 = vpop.xlane.xlu0 %1046 }
 0x3a1   : > { %4143 = vpow2.f32 %v884_v34  ;;  %v1048_v36 = vsub.f32 %v1041_v29, %v1047_v35 }
 0x3a3   : > { %v1049_v37 = vmul.f32 1.442695, %v1048_v36 }
 0x3a5   : > { %4145 = vpow2.f32 %v1049_v37 }
 0x3ab   : > { %v4144_v38 = vpop.eup %4143 }
 0x3ac   : > { %v886_v39 = vsel %vm804_vm3, %v4144_v38, 0.0 }
 0x3ad   : > { %887 = vadd.xlane.f32.xlu0 %v886_v39  ;;  %v3562_v39 = vld [vmem:[%s4861_s7] ss:$0 sm:$0xff] }
 0x3af   : > { %v4146_v40 = vpop.eup %4145 }
 0x3b0   : > { %v1051_v41 = vsel %vm804_vm3, %v4146_v40, 0.0 }
 0x3b1   : > { %1052 = vadd.xlane.f32.xlu1 %v1051_v41 }
 0x3c2   : > { %1056 = vrot.lane.b32.xlu1 %v4373_v20, %s4884_s29  ;;  %s4903_s29 = smov 104  }
 0x3c3   : > { %891 = vrot.lane.b32.xlu0 %v4373_v20, %s4198_s0 }
 0x3c6   : > { %1280 = vrot.lane.b32.xlu1 %v4373_v20, %s4882_s21  ;;  %s4901_s21 = smov 80  }
 0x3c7   : > { %1278 = vrot.lane.b32.xlu0 %v4378_v22, %s4883_s23 }
 0x43a   : > { %v888_v43 = vpop.xlane.xlu0 %887 }
 0x43b   : > { %4147 = vrcp.f32 %v888_v43 }
 0x43e   : > { %v892_v44 = vpop.permute.xlu0 %891  ;;  %v1053_v45 = vpop.xlane.xlu1 %1052 }
 0x43f   : > { %4149 = vrcp.f32 %v1053_v45  ;;  %3781 = vmatpush3.msra.mxu0 %v892_v44 }
 0x440   : > { %3790 = vmatprep.subr.mxu0 %v4193_v4 }
 0x442   : > { %v1057_v48 = vpop.permute.xlu1 %1056  ;;  %v1279_v57 = vpop.permute.xlu0 %1278 }
 0x445   : > { %v4148_v46 = vpop.eup %4147 }
 0x446   : > { %v890_v47 = vmul.f32 %v4148_v46, %v4144_v38  ;;  %v1281_v55 = vpop.permute.xlu1 %1280 }
 0x448   : > { %3783 = vmatmul.mubr.msk.f32.vlgmr.msra.gmra.mrb[4].mxu0 %vm804_vm3, %v890_v47 }
 0x449   : > { %v4150_v49 = vpop.eup %4149  ;;  %3791 = vmatpush3.msra.mxu0 %v1057_v48  ;;  %3792 = vmatprep.mubr.msk.f32.mxu0 %vm4192_vm0, %v4193_v4 }
 0x44a   : > { %v1055_v50 = vmul.f32 %v4150_v49, %v4146_v40  ;;  %3800 = vmatprep.subr.mxu0 %v4193_v4 }
 0x44c   : > { %3793 = vmatmul.mubr.msk.f32.vlgmr.msra.gmra.mrb[6].mxu0 %vm804_vm3, %v1055_v50  ;;  %v1795_v50 = vld [vmem:[%s4864_s10] sm:$0xff] }
 0x44d   : > { %3802 = vmatprep.mubr.msk.f32.mxu0 %vm4192_vm0, %v4193_v4  ;;  %3801 = vmatpush3.msra.mxu0 %v797_v51  ;;  %v1796_v51 = vld [vmem:[%s4864_s10 + $0x8] sm:$0xff] }
 0x44e   : > { %3810 = vmatprep.subr.mxu0 %v4193_v4 }
 0x51b   : > { %v963_v52 = vpop.f32.mrb[4].mxu0 }
 0x51c   : > { %v3784_v53 = vpop.f32.mrb[5].mxu0  ;;  %3803 = vmatmul.mubr.msk.f32.vlgmr.msra.gmra.mrb[8].mxu0 %vm804_vm3, %v963_v52  ;;  %v4038_v52 = vpack.c.bf16 %v1796_v51, %v1795_v50 }
 0x51d   : > { %3812 = vmatprep.mubr.msk.f32.mxu0 %vm4192_vm0, %v4193_v4  ;;  %v1798_v53 = vld [vmem:[%s4864_s10 + $0x18] sm:$0xff] }
 0x51f   : > { %v1128_v54 = vpop.f32.mrb[6].mxu0 }
 0x520   : > { %v3794_v56 = vpop.f32.mrb[7].mxu0  ;;  %3798 = vmatmul.mubr.msk.f32.vlgmr.msra.gmra.mrb[4].mxu1 %vm804_vm3, %v1128_v54 }
 0x521   : > { %3806 = vmatpush3.xpose.msk.msra.mxu1 %vm804_vm3, %v1281_v55  ;;  %3807 = vmatprep.mubr.msk.f32.mxu1 %vm4192_vm0, %v4193_v4  ;;  %v1880_v55 = vld [vmem:[%s4866_s12] sm:$0xff]  ;;  %v1881_v56 = vld [vmem:[%s4866_s12 + $0x8] sm:$0xff] }
 0x522   : > { %3815 = vmatprep.subr.mxu1 %v4193_v4 }
 0x524   : > { %3808 = vmatmul.mubr.msk.f32.vlgmr.msra.gmra.mrb[6].mxu1 %vm804_vm3, %v1279_v57  ;;  %v1882_v57 = vld [vmem:[%s4866_s12 + $0x10] sm:$0xff] }
 0x525   : > { %3817 = vmatprep.mubr.msk.f32.mxu1 %vm4192_vm0, %v4193_v4  ;;  %3816 = vmatpush3.msra.mxu1 %v799_v16 }
 0x526   : > { %3825 = vmatprep.subr.mxu1 %v4193_v4 }
 0x5ef   : > { %v1274_v58 = vpop.f32.mrb[8].mxu0 }
 0x5f0   : > { %v3804_v59 = vpop.f32.mrb[9].mxu0 }
 0x5f1   : > { %v1883_v59 = vld [vmem:[%s4866_s12 + $0x18] sm:$0xff] }
 0x5f3   : > { %v1201_v60 = vpop.f32.mrb[4].mxu1 }
 0x5f4   : > { %v1275_v61 = vadd.f32 %v1274_v58, %v1201_v60  ;;  %v3799_v62 = vpop.f32.mrb[5].mxu1  ;;  %v4044_v58 = vpack.c.bf16 %v1881_v56, %v1880_v55  ;;  %v4047_v60 = vpack.c.bf16 %v1883_v59, %v1882_v57  ;;  %v3569_v55 = vld [vmem:[%s4869_s15] ss:$0 sm:$0xff] }
 0x5f5   : > { %v1885_v62 = vld [vmem:[%s4866_s12 + $0x28] sm:$0xff] }
 0x5f7   : > { %v1352_v63 = vpop.f32.mrb[6].mxu1 }
 0x5f8   : > { %v3809_v0 = vpop.f32.mrb[7].mxu1  ;;  %v1356_v1 = vsel %vm804_vm3, %v1352_v63, -inf }
 0x5f9   : > { %1357 = vmax.xlane.f32.xlu1 %v1356_v1  ;;  %v1886_v0 = vld [vmem:[%s4866_s12 + $0x30] sm:$0xff]  ;;  %v1887_v1 = vld [vmem:[%s4866_s12 + $0x38] sm:$0xff] }
 0x60a   : > { %1519 = vrot.lane.b32.xlu1 %v4373_v20, %s4878_s25  ;;  %s4900_s25 = smov 112  }
 0x60e   : > { %1517 = vrot.lane.b32.xlu1 %v4378_v22, %s4879_s3  ;;  %s4880_s3 = smov 40  }
 0x686   : > { %v1358_v3 = vpop.xlane.xlu1 %1357 }
 0x687   : > { %v1359_v5 = vsub.f32 %v1352_v63, %v1358_v3  ;;  %v4053_v3 = vpack.c.bf16 %v1887_v1, %v1886_v0 }
 0x689   : > { %v1360_v6 = vmul.f32 1.442695, %v1359_v5  ;;  %v1888_v5 = vld [vmem:[%s4866_s12 + $0x40] sm:$0xff] }
 0x68a   : > { %v1520_v12 = vpop.permute.xlu1 %1519 }
 0x68b   : > { %4151 = vpow2.f32 %v1360_v6  ;;  %v1889_v6 = vld [vmem:[%s4866_s12 + $0x48] sm:$0xff] }
 0x68e   : > { %v1518_v14 = vpop.permute.xlu1 %1517 }
 0x695   : > { %v4152_v7 = vpop.eup %4151 }
 0x696   : > { %v1362_v8 = vsel %vm804_vm3, %v4152_v7, 0.0 }
 0x697   : > { %1363 = vadd.xlane.f32.xlu0 %v1362_v8  ;;  %v1890_v8 = vld [vmem:[%s4866_s12 + $0x50] sm:$0xff] }
 0x6ad   : > { %1367 = vrot.lane.b32.xlu0 %v4373_v20, %s4881_s24  ;;  %s4905_s24 = smov 40  }
 0x724   : > { %v1364_v9 = vpop.xlane.xlu0 %1363 }
 0x725   : > { %4153 = vrcp.f32 %v1364_v9  ;;  %v1891_v9 = vld [vmem:[%s4866_s12 + $0x58] sm:$0xff] }
 0x728   : > { %v1368_v10 = vpop.permute.xlu0 %1367 }
 0x729   : > { %3811 = vmatpush3.msra.mxu0 %v1368_v10  ;;  %v4059_v10 = vpack.c.bf16 %v1891_v9, %v1890_v8 }
 0x72a   : > { %3820 = vmatprep.subr.mxu0 %v4193_v4 }
 0x72f   : > { %v4154_v11 = vpop.eup %4153 }
 0x730   : > { %v1366_v13 = vmul.f32 %v4154_v11, %v4152_v7  ;;  %v4056_v7 = vpack.c.bf16 %v1889_v6, %v1888_v5  ;;  %v1892_v11 = vld [vmem:[%s4866_s12 + $0x60] sm:$0xff] }
 0x732   : > { %3813 = vmatmul.mubr.msk.f32.vlgmr.msra.gmra.mrb[10].mxu0 %vm804_vm3, %v1366_v13 }
 0x733   : > { %3821 = vmatpush3.xpose.msk.msra.mxu0 %vm804_vm3, %v1520_v12  ;;  %3822 = vmatprep.mubr.msk.f32.mxu0 %vm4192_vm0, %v4193_v4  ;;  %v1893_v12 = vld [vmem:[%s4866_s12 + $0x68] sm:$0xff] }
 0x734   : > { %3830 = vmatprep.subr.mxu0 %v4193_v4  ;;  %v4062_v13 = vpack.c.bf16 %v1893_v12, %v1892_v11 }
 0x736   : > { %3823 = vmatmul.mubr.msk.f32.vlgmr.msra.gmra.mrb[12].mxu0 %vm804_vm3, %v1518_v14 }
 0x737   : > { %3832 = vmatprep.mubr.msk.f32.mxu0 %vm4192_vm0, %v4193_v4  ;;  %3831 = vmatpush3.msra.mxu0 %v800_v30 }
 0x738   : > { %4043 = vmatprep.subr.bf16.mxu0 %v4191_v2 }
 0x805   : > { %v1439_v18 = vpop.f32.mrb[10].mxu0 }
 0x806   : > { %v3814_v19 = vpop.f32.mrb[11].mxu0  ;;  %3818 = vmatmul.mubr.msk.f32.vlgmr.msra.gmra.mrb[8].mxu1 %vm804_vm3, %v1439_v18 }
 0x807   : > { %3827 = vmatprep.mubr.msk.f32.mxu1 %vm4192_vm0, %v4193_v4 }
 0x809   : > { %v1591_v21 = vpop.f32.mrb[12].mxu0 }
 0x80a   : > { %v3824_v22 = vpop.f32.mrb[13].mxu0  ;;  %v1595_v23 = vsel %vm804_vm3, %v1591_v21, -inf }
 0x80b   : > { %1596 = vmax.xlane.f32.xlu0 %v1595_v23  ;;  %v3564_v23 = vld [vmem:[%s4863_s9] ss:$0 sm:$0xff] }
 0x821   : > { %1606 = vrot.lane.b32.xlu0 %v4373_v20, %s4880_s3  ;;  %s4898_s3 = smov 88  }
 0x898   : > { %v1597_v24 = vpop.xlane.xlu0 %1596 }
 0x899   : > { %v1598_v25 = vsub.f32 %v1591_v21, %v1597_v24  ;;  %v3563_v21 = vld [vmem:[%s4862_s8] ss:$0 sm:$0xff] }
 0x89b   : > { %v1599_v26 = vmul.f32 1.442695, %v1598_v25 }
 0x89c   : > { %v1607_v27 = vpop.permute.xlu0 %1606 }
 0x89d   : > { %4155 = vpow2.f32 %v1599_v26  ;;  %3826 = vmatpush3.msra.mxu1 %v1607_v27  ;;  %v1894_v26 = vld [vmem:[%s4866_s12 + $0x70] sm:$0xff]  ;;  %v1895_v27 = vld [vmem:[%s4866_s12 + $0x78] sm:$0xff] }
 0x89e   : > { %4037 = vmatprep.subr.bf16.mxu1 %v4191_v2 }
 0x8a7   : > { %v4156_v28 = vpop.eup %4155 }
 0x8a8   : > { %v1601_v29 = vsel %vm804_vm3, %v4156_v28, 0.0 }
 0x8a9   : > { %1602 = vadd.xlane.f32.xlu1 %v1601_v29  ;;  %v3565_v29 = vld [vmem:[%s4865_s11] ss:$0 sm:$0xff] }
 0x8d9   : > { %v1512_v20 = vpop.f32.mrb[8].mxu1 }
 0x8da   : > { %v1516_v31 = vadd.f32 %v1512_v20, %v1275_v61  ;;  %v3819_v32 = vpop.f32.mrb[9].mxu1  ;;  %v1884_v61 = vld [vmem:[%s4866_s12 + $0x20] sm:$0xff] }
 0x8db   : > { %v4050_v63 = vpack.c.bf16 %v1885_v62, %v1884_v61 }
 0x936   : > { %v1603_v33 = vpop.xlane.xlu1 %1602 }
 0x937   : > { %4157 = vrcp.f32 %v1603_v33  ;;  %v3567_v33 = vld [vmem:[%s4867_s13] ss:$0 sm:$0xff] }
 0x941   : > { %v4158_v34 = vpop.eup %4157 }
 0x942   : > { %v1605_v35 = vmul.f32 %v4158_v34, %v4156_v28  ;;  %v4065_v28 = vpack.c.bf16 %v1895_v27, %v1894_v26 }
 0x944   : > { %3828 = vmatmul.mubr.msk.f32.vlgmr.msra.gmra.mrb[10].mxu1 %vm804_vm3, %v1605_v35 }
 0x945   : > { %3843 = vmatprep.mubr.msk.f32.mxu1 %vm4192_vm0, %v4193_v4  ;;  %4039 = vmatpush3.bf16.msra.mxu1 %v4038_v52 }
 0x946   : > { %4040 = vmatprep.subr.bf16.mxu1 %v4191_v2 }
 0xa17   : > { %v1678_v36 = vpop.f32.mrb[10].mxu1 }
 0xa18   : > { %v3829_v37 = vpop.f32.mrb[11].mxu1  ;;  %3833 = vmatmul.mubr.msk.f32.vlgmr.msra.gmra.mrb[14].mxu0 %vm804_vm3, %v1678_v36 }
 0xa19   : > { %3878 = vmatprep.mubr.msk.f32.mxu0 %vm4192_vm0, %v4193_v4  ;;  %4045 = vmatpush3.bf16.msra.mxu0 %v4044_v58  ;;  %v3575_v58 = vld [vmem:[%s4859_s5 + $0x1] ss:$0 sm:$0xff] }
 0xa1a   : > { %4046 = vmatprep.subr.bf16.mxu0 %v4191_v2 }
 0xa1d   : > { %4048 = vmatpush3.bf16.msra.mxu0 %v4047_v60 }
 0xa1e   : > { %4049 = vmatprep.subr.bf16.mxu0 %v4191_v2 }
 0xa21   : > { %4051 = vmatpush3.bf16.msra.mxu0 %v4050_v63 }
 0xa22   : > { %4052 = vmatprep.subr.bf16.mxu0 %v4191_v2 }
 0xa25   : > { %4054 = vmatpush3.bf16.msra.mxu0 %v4053_v3 }
 0xa26   : > { %4055 = vmatprep.subr.bf16.mxu0 %v4191_v2 }
 0xa29   : > { %4057 = vmatpush3.bf16.msra.mxu0 %v4056_v7 }
 0xa2a   : > { %4058 = vmatprep.subr.bf16.mxu0 %v4191_v2 }
 0xa2d   : > { %4060 = vmatpush3.bf16.msra.mxu0 %v4059_v10 }
 0xa2e   : > { %4061 = vmatprep.subr.bf16.mxu0 %v4191_v2 }
 0xa31   : > { %4063 = vmatpush3.bf16.msra.mxu0 %v4062_v13 }
 0xa32   : > { %4064 = vmatprep.subr.bf16.mxu0 %v4191_v2 }
 0xa35   : > { %4066 = vmatpush3.bf16.msra.mxu0 %v4065_v28 }
 0xa36   : > { %3917 = vmatprep.subr.mxu0 %v4193_v4 }
 0xaeb   : > { %v1751_v38 = vpop.f32.mrb[14].mxu0 }
 0xaec   : > { %v1755_v40 = vadd.f32 %v1751_v38, %v1516_v31  ;;  %v3834_v41 = vpop.f32.mrb[15].mxu0 }
 0xaee   : > { %v1763_v42 = vadd.f32 %v3562_v39, %v1755_v40 }
 0xaf0   : > { %v1764_v43 = vadd.f32 %v1763_v42, %v4364_v17  ;;  %v1797_v17 = vld [vmem:[%s4864_s10 + $0x10] sm:$0xff] }
 0xaf1   : > { %v4041_v54 = vpack.c.bf16 %v1798_v53, %v1797_v17  ;;  %v3568_v53 = vld [vmem:[%s4868_s14] ss:$0 sm:$0xff] }
 0xaf2   : > { %v1767_v44 = vsel %vm722_vm2, %v1764_v43, 0.0 }
 0xaf3   : > { %1768 = vadd.xlane.f32.xlu1 %v1767_v44  ;;  %4042 = vmatpush3.bf16.msra.mxu1 %v4041_v54  ;;  %v3570_v44 = vld [vmem:[%s4893_s28 + $0x20] sm:$0xff] }
 0xaf4   : > { %4067 = vmatprep.subr.bf16.mxu1 %v4191_v2 }
 0xb80   : > { %v1769_v45 = vpop.xlane.xlu1 %1768 }
 0xb81   : > { %v1771_v46 = vmul.f32 0.03125, %v1769_v45  ;;  %v3571_v45 = vld [vmem:[%s4893_s28 + $0x28] sm:$0xff] }
 0xb83   : > { %v1772_v47 = vsub.f32 %v1764_v43, %v1771_v46  ;;  %v4068_v46 = vpack.c.bf16 %v3571_v45, %v3570_v44 }
 0xb85   : > { %v1773_v48 = vmul.f32 %v1772_v47, %v1772_v47 }
 0xb87   : > { %v1774_v49 = vsel %vm722_vm2, %v1773_v48, 0.0  ;;  %v3573_v48 = vld [vmem:[%s4893_s28 + $0x38] sm:$0xff] }
 0xb88   : > { %1775 = vadd.xlane.f32.xlu1 %v1774_v49 }
 0xc15   : > { %v1776_v14 = vpop.xlane.xlu1 %1775 }
 0xc16   : > { %v1777_v16 = vmul.f32 0.03125, %v1776_v14 }
 0xc18   : > { %v1778_v18 = vadd.f32 1e-05, %v1777_v16 }
 0xc1a   : > { %4159 = vrsqrt.f32 %v1778_v18  ;;  %v3577_v18 = vld [vmem:[%s4860_s6 + $0x20] sm:$0xff] }
 0xc24   : > { %v4160_v19 = vpop.eup %4159 }
 0xc25   : > { %v1780_v22 = vmul.f32 %v4160_v19, %v1772_v47  ;;  %v3572_v47 = vld [vmem:[%s4893_s28 + $0x30] sm:$0xff] }
 0xc26   : > { %v4071_v49 = vpack.c.bf16 %v3573_v48, %v3572_v47 }
 0xc27   : > { %v1787_v24 = vmul.f32 %v3563_v21, %v1780_v22 }
 0xc29   : > { %v1794_v25 = vadd.f32 %v3564_v23, %v1787_v24 }
 0xc2b   : > { %3844 = vmatmul.mubr.msk.f32.vlgmr.msra.gmra.mrb[12].mxu1 %vm722_vm2, %v1794_v25 }
 0xc2c   : > { %3889 = vmatprep.mubr.msk.f32.mxu1 %vm4192_vm0, %v4193_v4  ;;  %4069 = vmatpush3.bf16.msra.mxu1 %v4068_v46 }
 0xc2d   : > { %4070 = vmatprep.subr.bf16.mxu1 %v4191_v2 }
 0xc30   : > { %4072 = vmatpush3.bf16.msra.mxu1 %v4071_v49 }
 0xc31   : > { %3892 = vmatprep.subr.mxu1 %v4193_v4 }
 0xcfe   : > { %v1875_v30 = vpop.f32.mrb[12].mxu1 }
 0xcff   : > { %v1876_v20 = vadd.f32 %v3565_v29, %v1875_v30  ;;  %v3845_v31 = vpop.f32.mrb[13].mxu1 }
 0xd01   : > { %v1879_v32 = vmax.f32 %v1876_v20, 0.0 }
 0xd03   : > { %3879 = vmatmul.mubr.f32.vlgmr.msra.gmra.mrb[16].mxu0 %v1879_v32 }
 0xd04   : > { %3919 = vmatprep.mubr.msk.f32.mxu0 %vm4192_vm0, %v4193_v4  ;;  %3918 = vmatpush3.msra.mxu0 %v3577_v18 }
 0xd05   : > { %3927 = vmatprep.subr.mxu0 %v4193_v4 }
 0xdd6   : > { %v1969_v34 = vpop.f32.mrb[16].mxu0 }
 0xdd7   : > { %v1970_v35 = vadd.f32 %v3567_v33, %v1969_v34  ;;  %v3880_v36 = vpop.f32.mrb[17].mxu0 }
 0xdd9   : > { %v1973_v37 = vadd.f32 %v1970_v35, %v1794_v25  ;;  %v3578_v35 = vld [vmem:[%s4860_s6 + $0x28] sm:$0xff] }
 0xddb   : > { %v1976_v38 = vsel %vm722_vm2, %v1973_v37, 0.0 }
 0xddc   : > { %1977 = vadd.xlane.f32.xlu1 %v1976_v38 }
 0xe69   : > { %v1978_v39 = vpop.xlane.xlu1 %1977 }
 0xe6a   : > { %v1979_v40 = vmul.f32 0.03125, %v1978_v39 }
 0xe6c   : > { %v1980_v41 = vsub.f32 %v1973_v37, %v1979_v40 }
 0xe6e   : > { %v1981_v42 = vmul.f32 %v1980_v41, %v1980_v41 }
 0xe70   : > { %v1982_v43 = vsel %vm722_vm2, %v1981_v42, 0.0 }
 0xe71   : > { %1983 = vadd.xlane.f32.xlu1 %v1982_v43 }
 0xefe   : > { %v1984_v50 = vpop.xlane.xlu1 %1983 }
 0xeff   : > { %v1985_v51 = vmul.f32 0.03125, %v1984_v50 }
 0xf01   : > { %v1986_v52 = vadd.f32 1e-05, %v1985_v51 }
 0xf03   : > { %4161 = vrsqrt.f32 %v1986_v52 }
 0xf0d   : > { %v4162_v17 = vpop.eup %4161 }
 0xf0e   : > { %v1988_v54 = vmul.f32 %v4162_v17, %v1980_v41 }
 0xf10   : > { %v1995_v56 = vmul.f32 %v3568_v53, %v1988_v54 }
 0xf12   : > { %v4588_v57 = vadd.f32 %v3569_v55, %v1995_v56  ;;  %v3579_v56 = vld [vmem:[%s4860_s6 + $0x30] sm:$0xff] }
 0xf14   : > { %3890 = vmatmul.mubr.msk.f32.vlgmr.msra.gmra.mrb[14].mxu1 %vm722_vm2, %v4588_v57 }
 0xf15   : > { %3894 = vmatprep.mubr.msk.f32.mxu1 %vm4192_vm0, %v4193_v4 }
 0xfe7   : > { %v2085_v59 = vpop.f32.mrb[14].mxu1 }
 0xfe8   : > { %v4597_v60 = vadd.f32 %v3575_v58, %v2085_v59  ;;  %v3891_v61 = vpop.f32.mrb[15].mxu1 }
 0xfea   : > { %2096 = vrot.lane.b32.xlu1 %v4597_v60, %s4194_s26  ;;  %v4603_v63 = vmul.f32 0.35355338, %v4597_v60  ;;  %s4897_s26 = smov 120  }
0x105c   : > { %v2097_v62 = vpop.permute.xlu1 %2096 }
0x105d   : > { %3893 = vmatpush3.xpose.msk.msra.mxu1 %vm804_vm3, %v2097_v62 }
0x105e   : > { %3897 = vmatprep.subr.mxu1 %v4193_v4 }
0x1060   : > { %3895 = vmatmul.mubr.msk.f32.vlgmr.msra.gmra.mrb[16].mxu1 %vm804_vm3, %v4603_v63 }
0x1061   : > { %3899 = vmatprep.mubr.msk.f32.mxu1 %vm4192_vm0, %v4193_v4 }
0x1133   : > { %v2169_v0 = vpop.f32.mrb[16].mxu1 }
0x1134   : > { %v3896_v1 = vpop.f32.mrb[17].mxu1  ;;  %v2173_v3 = vsel %vm804_vm3, %v2169_v0, -inf }
0x1135   : > { %2174 = vmax.xlane.f32.xlu0 %v2173_v3 }
0x114b   : > { %2184 = vrot.lane.b32.xlu0 %v4597_v60, %s4198_s0 }
0x114f   : > { %2260 = vrot.lane.b32.xlu0 %v4603_v63, %s4897_s26  ;;  %s4904_s26 = smov 72  }
0x11c2   : > { %v2175_v5 = vpop.xlane.xlu0 %2174 }
0x11c3   : > { %v2176_v6 = vsub.f32 %v2169_v0, %v2175_v5 }
0x11c5   : > { %v2177_v7 = vmul.f32 1.442695, %v2176_v6 }
0x11c6   : > { %v2185_v8 = vpop.permute.xlu0 %2184 }
0x11c7   : > { %4163 = vpow2.f32 %v2177_v7  ;;  %3898 = vmatpush3.msra.mxu1 %v2185_v8  ;;  %v3580_v8 = vld [vmem:[%s4860_s6 + $0x38] sm:$0xff] }
0x11c8   : > { %3902 = vmatprep.subr.mxu1 %v4193_v4 }
0x11ca   : > { %v2261_v16 = vpop.permute.xlu0 %2260 }
0x11d1   : > { %v4164_v9 = vpop.eup %4163 }
0x11d2   : > { %v2179_v10 = vsel %vm804_vm3, %v4164_v9, 0.0 }
0x11d3   : > { %2180 = vadd.xlane.f32.xlu1 %v2179_v10 }
0x11e4   : > { %2262 = vrot.lane.b32.xlu1 %v4597_v60, %s4898_s3 }
0x1260   : > { %v2181_v11 = vpop.xlane.xlu1 %2180 }
0x1261   : > { %4165 = vrcp.f32 %v2181_v11 }
0x1264   : > { %v2263_v14 = vpop.permute.xlu1 %2262 }
0x126b   : > { %v4166_v12 = vpop.eup %4165 }
0x126c   : > { %v2183_v13 = vmul.f32 %v4166_v12, %v4164_v9 }
0x126e   : > { %3900 = vmatmul.mubr.msk.f32.vlgmr.msra.gmra.mrb[18].mxu1 %vm804_vm3, %v2183_v13 }
0x126f   : > { %3903 = vmatpush3.xpose.msk.msra.mxu1 %vm804_vm3, %v2263_v14  ;;  %3904 = vmatprep.mubr.msk.f32.mxu1 %vm4192_vm0, %v4193_v4 }
0x1270   : > { %3907 = vmatprep.subr.mxu1 %v4193_v4 }
0x1272   : > { %3905 = vmatmul.mubr.msk.f32.vlgmr.msra.gmra.mrb[20].mxu1 %vm804_vm3, %v2261_v16 }
0x1273   : > { %3909 = vmatprep.mubr.msk.f32.mxu1 %vm4192_vm0, %v4193_v4 }
0x1341   : > { %v2256_v19 = vpop.f32.mrb[18].mxu1 }
0x1342   : > { %v3901_v21 = vpop.f32.mrb[19].mxu1  ;;  %3920 = vmatmul.mubr.msk.f32.vlgmr.msra.gmra.mrb[18].mxu0 %vm804_vm3, %v2256_v19  ;;  %v3598_v19 = vld [vmem:[%s4861_s7 + $0x1] ss:$0 sm:$0xff] }
0x1343   : > { %3929 = vmatprep.mubr.msk.f32.mxu0 %vm4192_vm0, %v4193_v4 }
0x1345   : > { %v2334_v22 = vpop.f32.mrb[20].mxu1 }
0x1346   : > { %v3906_v23 = vpop.f32.mrb[21].mxu1  ;;  %v2338_v24 = vsel %vm804_vm3, %v2334_v22, -inf }
0x1347   : > { %2339 = vmax.xlane.f32.xlu0 %v2338_v24 }
0x135d   : > { %2349 = vrot.lane.b32.xlu0 %v4597_v60, %s4899_s30 }
0x1361   : > { %2571 = vrot.lane.b32.xlu0 %v4603_v63, %s4900_s25 }
0x13d4   : > { %v2340_v25 = vpop.xlane.xlu0 %2339 }
0x13d5   : > { %v2341_v26 = vsub.f32 %v2334_v22, %v2340_v25 }
0x13d7   : > { %v2342_v27 = vmul.f32 1.442695, %v2341_v26 }
0x13d8   : > { %v2350_v28 = vpop.permute.xlu0 %2349 }
0x13d9   : > { %4167 = vpow2.f32 %v2342_v27  ;;  %3908 = vmatpush3.msra.mxu1 %v2350_v28 }
0x13da   : > { %3912 = vmatprep.subr.mxu1 %v4193_v4 }
0x13dc   : > { %v2572_v39 = vpop.permute.xlu0 %2571 }
0x13e3   : > { %v4168_v29 = vpop.eup %4167 }
0x13e4   : > { %v2344_v30 = vsel %vm804_vm3, %v4168_v29, 0.0 }
0x13e5   : > { %2345 = vadd.xlane.f32.xlu1 %v2344_v30 }
0x13f6   : > { %2573 = vrot.lane.b32.xlu1 %v4597_v60, %s4901_s21 }
0x1415   : > { %v2567_v20 = vpop.f32.mrb[18].mxu0 }
0x1416   : > { %v3921_v31 = vpop.f32.mrb[19].mxu0 }
0x1417   : > { %v3604_v31 = vld [vmem:[%s4864_s10 + $0x28] sm:$0xff] }
0x1472   : > { %v2346_v32 = vpop.xlane.xlu1 %2345 }
0x1473   : > { %4169 = vrcp.f32 %v2346_v32 }
0x1476   : > { %v2574_v37 = vpop.permute.xlu1 %2573 }
0x147d   : > { %v4170_v33 = vpop.eup %4169 }
0x147e   : > { %v2348_v34 = vmul.f32 %v4170_v33, %v4168_v29  ;;  %v3606_v33 = vld [vmem:[%s4864_s10 + $0x38] sm:$0xff] }
0x1480   : > { %3910 = vmatmul.mubr.msk.f32.vlgmr.msra.gmra.mrb[22].mxu1 %vm804_vm3, %v2348_v34 }
0x1481   : > { %3913 = vmatpush3.msra.mxu1 %v3578_v35  ;;  %3914 = vmatprep.mubr.msk.f32.mxu1 %vm4192_vm0, %v4193_v4  ;;  %v3610_v35 = vld [vmem:[%s4866_s12 + $0x80] sm:$0xff] }
0x1482   : > { %3922 = vmatprep.subr.mxu1 %v4193_v4 }
0x1553   : > { %v2421_v36 = vpop.f32.mrb[22].mxu1 }
0x1554   : > { %v3911_v38 = vpop.f32.mrb[23].mxu1  ;;  %3915 = vmatmul.mubr.msk.f32.vlgmr.msra.gmra.mrb[24].mxu1 %vm804_vm3, %v2421_v36  ;;  %v3611_v36 = vld [vmem:[%s4866_s12 + $0x88] sm:$0xff] }
0x1555   : > { %3923 = vmatpush3.xpose.msk.msra.mxu1 %vm804_vm3, %v2574_v37  ;;  %3924 = vmatprep.mubr.msk.f32.mxu1 %vm4192_vm0, %v4193_v4  ;;  %v3612_v37 = vld [vmem:[%s4866_s12 + $0x90] sm:$0xff]  ;;  %v4080_v38 = vpack.c.bf16 %v3611_v36, %v3610_v35  ;;  %v3631_v35 = vld [vmem:[%s4869_s15 + $0x1] ss:$0 sm:$0xff] }
0x1556   : > { %3932 = vmatprep.subr.mxu1 %v4193_v4 }
0x1558   : > { %3925 = vmatmul.mubr.msk.f32.vlgmr.msra.gmra.mrb[26].mxu1 %vm804_vm3, %v2572_v39  ;;  %v3613_v39 = vld [vmem:[%s4866_s12 + $0x98] sm:$0xff] }
0x1559   : > { %3934 = vmatprep.mubr.msk.f32.mxu1 %vm4192_vm0, %v4193_v4  ;;  %3933 = vmatpush3.msra.mxu1 %v3579_v56 }
0x155a   : > { %3942 = vmatprep.subr.mxu1 %v4193_v4 }
0x1627   : > { %v2494_v40 = vpop.f32.mrb[24].mxu1 }
0x1628   : > { %v2568_v41 = vadd.f32 %v2567_v20, %v2494_v40  ;;  %v3916_v42 = vpop.f32.mrb[25].mxu1  ;;  %v3603_v20 = vld [vmem:[%s4864_s10 + $0x20] sm:$0xff]  ;;  %v4083_v40 = vpack.c.bf16 %v3613_v39, %v3612_v37  ;;  %v3392_v39 = vld [vmem:[%s4872_s18 + $0x8] sm:$0xff] }
0x1629   : > { %v4074_v32 = vpack.c.bf16 %v3604_v31, %v3603_v20  ;;  %v3615_v42 = vld [vmem:[%s4866_s12 + $0xa8] sm:$0xff] }
0x162b   : > { %v2645_v43 = vpop.f32.mrb[26].mxu1 }
0x162c   : > { %v3926_v44 = vpop.f32.mrb[27].mxu1  ;;  %v2649_v45 = vsel %vm804_vm3, %v2645_v43, -inf }
0x162d   : > { %2650 = vmax.xlane.f32.xlu0 %v2649_v45  ;;  %v3616_v44 = vld [vmem:[%s4866_s12 + $0xb0] sm:$0xff]  ;;  %v3617_v45 = vld [vmem:[%s4866_s12 + $0xb8] sm:$0xff] }
0x1643   : > { %2660 = vrot.lane.b32.xlu0 %v4597_v60, %s4902_s27 }
0x1647   : > { %2810 = vrot.lane.b32.xlu0 %v4603_v63, %s4903_s29 }
0x16ba   : > { %v2651_v46 = vpop.xlane.xlu0 %2650 }
0x16bb   : > { %v2652_v47 = vsub.f32 %v2645_v43, %v2651_v46  ;;  %v4089_v46 = vpack.c.bf16 %v3617_v45, %v3616_v44  ;;  %v3394_v44 = vld [vmem:[%s4872_s18 + $0x18] sm:$0xff] }
0x16bd   : > { %v2653_v48 = vmul.f32 1.442695, %v2652_v47  ;;  %v3618_v47 = vld [vmem:[%s4866_s12 + $0xc0] sm:$0xff] }
0x16be   : > { %v2661_v49 = vpop.permute.xlu0 %2660 }
0x16bf   : > { %4171 = vpow2.f32 %v2653_v48  ;;  %3928 = vmatpush3.msra.mxu0 %v2661_v49  ;;  %v3619_v48 = vld [vmem:[%s4866_s12 + $0xc8] sm:$0xff] }
0x16c0   : > { %3937 = vmatprep.subr.mxu0 %v4193_v4  ;;  %v4092_v49 = vpack.c.bf16 %v3619_v48, %v3618_v47  ;;  %v3398_v48 = vld [vmem:[%s4872_s18 + $0x38] sm:$0xff] }
0x16c2   : > { %v2811_v55 = vpop.permute.xlu0 %2810 }
0x16c9   : > { %v4172_v50 = vpop.eup %4171 }
0x16ca   : > { %v2655_v51 = vsel %vm804_vm3, %v4172_v50, 0.0 }
0x16cb   : > { %2656 = vadd.xlane.f32.xlu1 %v2655_v51  ;;  %v3621_v51 = vld [vmem:[%s4866_s12 + $0xd8] sm:$0xff] }
0x16dc   : > { %2812 = vrot.lane.b32.xlu1 %v4597_v60, %s4904_s26  ;;  %s4906_s26 = sshll.u32 %s4908_s22, 3 }
0x1758   : > { %v2657_v52 = vpop.xlane.xlu1 %2656 }
0x1759   : > { %4173 = vrcp.f32 %v2657_v52 }
0x175c   : > { %v2813_v54 = vpop.permute.xlu1 %2812 }
0x1763   : > { %v4174_v17 = vpop.eup %4173 }
0x1764   : > { %v2659_v53 = vmul.f32 %v4174_v17, %v4172_v50  ;;  %v3620_v50 = vld [vmem:[%s4866_s12 + $0xd0] sm:$0xff]  ;;  %v3622_v17 = vld [vmem:[%s4866_s12 + $0xe0] sm:$0xff] }
0x1765   : > { %v4095_v52 = vpack.c.bf16 %v3621_v51, %v3620_v50  ;;  %v3632_v50 = vld [vmem:[%s4871_s17] ss:$0 sm:$0xff] }
0x1766   : > { %3930 = vmatmul.mubr.msk.f32.vlgmr.msra.gmra.mrb[20].mxu0 %vm804_vm3, %v2659_v53  ;;  %v3623_v53 = vld [vmem:[%s4866_s12 + $0xe8] sm:$0xff] }
0x1767   : > { %3938 = vmatpush3.xpose.msk.msra.mxu0 %vm804_vm3, %v2813_v54  ;;  %3939 = vmatprep.mubr.msk.f32.mxu0 %vm4192_vm0, %v4193_v4  ;;  %v4098_v54 = vpack.c.bf16 %v3623_v53, %v3622_v17 }
0x1768   : > { %3947 = vmatprep.subr.mxu0 %v4193_v4 }
0x176a   : > { %3940 = vmatmul.mubr.msk.f32.vlgmr.msra.gmra.mrb[22].mxu0 %vm804_vm3, %v2811_v55 }
0x176b   : > { %3949 = vmatprep.mubr.msk.f32.mxu0 %vm4192_vm0, %v4193_v4  ;;  %3948 = vmatpush3.msra.mxu0 %v3580_v8 }
0x176c   : > { %4079 = vmatprep.subr.bf16.mxu0 %v4191_v2 }
0x1839   : > { %v2732_v58 = vpop.f32.mrb[20].mxu0 }
0x183a   : > { %v3931_v59 = vpop.f32.mrb[21].mxu0  ;;  %3935 = vmatmul.mubr.msk.f32.vlgmr.msra.gmra.mrb[28].mxu1 %vm804_vm3, %v2732_v58 }
0x183b   : > { %3944 = vmatprep.mubr.msk.f32.mxu1 %vm4192_vm0, %v4193_v4 }
0x183d   : > { %v2884_v61 = vpop.f32.mrb[22].mxu0 }
0x183e   : > { %v3941_v62 = vpop.f32.mrb[23].mxu0  ;;  %v2888_v63 = vsel %vm804_vm3, %v2884_v61, -inf }
0x183f   : > { %2889 = vmax.xlane.f32.xlu0 %v2888_v63  ;;  %v3602_v63 = vld [vmem:[%s4863_s9 + $0x1] ss:$0 sm:$0xff] }
0x1855   : > { %2899 = vrot.lane.b32.xlu0 %v4597_v60, %s4905_s24  ;;  %s624_s24 = scalar_lea.vmem %s4874_s20, %s4906_s26 }
0x18cc   : > { %v2890_v0 = vpop.xlane.xlu0 %2889 }
0x18cd   : > { %v2891_v1 = vsub.f32 %v2884_v61, %v2890_v0  ;;  %v3601_v61 = vld [vmem:[%s4862_s8 + $0x1] ss:$0 sm:$0xff] }
0x18cf   : > { %v2892_v3 = vmul.f32 1.442695, %v2891_v1 }
0x18d0   : > { %v2900_v5 = vpop.permute.xlu0 %2899 }
0x18d1   : > { %4175 = vpow2.f32 %v2892_v3  ;;  %3943 = vmatpush3.msra.mxu1 %v2900_v5  ;;  %v3624_v3 = vld [vmem:[%s4866_s12 + $0xf0] sm:$0xff]  ;;  %v3625_v5 = vld [vmem:[%s4866_s12 + $0xf8] sm:$0xff] }
0x18d2   : > { %4073 = vmatprep.subr.bf16.mxu1 %v4191_v2 }
0x18db   : > { %v4176_v6 = vpop.eup %4175 }
0x18dc   : > { %v2894_v7 = vsel %vm804_vm3, %v4176_v6, 0.0 }
0x18dd   : > { %2895 = vadd.xlane.f32.xlu1 %v2894_v7  ;;  %v3608_v7 = vld [vmem:[%s4865_s11 + $0x1] ss:$0 sm:$0xff] }
0x190d   : > { %v2805_v60 = vpop.f32.mrb[28].mxu1 }
0x190e   : > { %v2809_v9 = vadd.f32 %v2805_v60, %v2568_v41  ;;  %v3936_v10 = vpop.f32.mrb[29].mxu1  ;;  %v3614_v41 = vld [vmem:[%s4866_s12 + $0xa0] sm:$0xff] }
0x190f   : > { %v4086_v43 = vpack.c.bf16 %v3615_v42, %v3614_v41 }
0x196a   : > { %v2896_v11 = vpop.xlane.xlu1 %2895 }
0x196b   : > { %4177 = vrcp.f32 %v2896_v11  ;;  %v3627_v11 = vld [vmem:[%s4867_s13 + $0x1] ss:$0 sm:$0xff] }
0x1975   : > { %v4178_v12 = vpop.eup %4177 }
0x1976   : > { %v2898_v13 = vmul.f32 %v4178_v12, %v4176_v6  ;;  %v4101_v6 = vpack.c.bf16 %v3625_v5, %v3624_v3 }
0x1978   : > { %3945 = vmatmul.mubr.msk.f32.vlgmr.msra.gmra.mrb[30].mxu1 %vm804_vm3, %v2898_v13 }
0x1979   : > { %3960 = vmatprep.mubr.msk.f32.mxu1 %vm4192_vm0, %v4193_v4  ;;  %4075 = vmatpush3.bf16.msra.mxu1 %v4074_v32 }
0x197a   : > { %4076 = vmatprep.subr.bf16.mxu1 %v4191_v2 }
0x1a4b   : > { %v2971_v14 = vpop.f32.mrb[30].mxu1 }
0x1a4c   : > { %v3946_v16 = vpop.f32.mrb[31].mxu1  ;;  %3950 = vmatmul.mubr.msk.f32.vlgmr.msra.gmra.mrb[24].mxu0 %vm804_vm3, %v2971_v14 }
0x1a4d   : > { %3995 = vmatprep.mubr.msk.f32.mxu0 %vm4192_vm0, %v4193_v4  ;;  %4081 = vmatpush3.bf16.msra.mxu0 %v4080_v38  ;;  %v3391_v38 = vld [vmem:[%s4872_s18] sm:$0xff] }
0x1a4e   : > { %4082 = vmatprep.subr.bf16.mxu0 %v4191_v2  ;;  %v4110_v41 = vpack.c.bf16 %v3392_v39, %v3391_v38 }
0x1a51   : > { %4084 = vmatpush3.bf16.msra.mxu0 %v4083_v40 }
0x1a52   : > { %4085 = vmatprep.subr.bf16.mxu0 %v4191_v2 }
0x1a55   : > { %4087 = vmatpush3.bf16.msra.mxu0 %v4086_v43  ;;  %v3393_v43 = vld [vmem:[%s4872_s18 + $0x10] sm:$0xff] }
0x1a56   : > { %4088 = vmatprep.subr.bf16.mxu0 %v4191_v2  ;;  %v4113_v45 = vpack.c.bf16 %v3394_v44, %v3393_v43 }
0x1a59   : > { %4090 = vmatpush3.bf16.msra.mxu0 %v4089_v46  ;;  %v3396_v46 = vld [vmem:[%s4872_s18 + $0x28] sm:$0xff] }
0x1a5a   : > { %4091 = vmatprep.subr.bf16.mxu0 %v4191_v2 }
0x1a5d   : > { %4093 = vmatpush3.bf16.msra.mxu0 %v4092_v49 }
0x1a5e   : > { %4094 = vmatprep.subr.bf16.mxu0 %v4191_v2 }
0x1a61   : > { %4096 = vmatpush3.bf16.msra.mxu0 %v4095_v52 }
0x1a62   : > { %4097 = vmatprep.subr.bf16.mxu0 %v4191_v2 }
0x1a65   : > { %4099 = vmatpush3.bf16.msra.mxu0 %v4098_v54 }
0x1a66   : > { %4100 = vmatprep.subr.bf16.mxu0 %v4191_v2 }
0x1a69   : > { %4102 = vmatpush3.bf16.msra.mxu0 %v4101_v6 }
0x1b1f   : > { %v3044_v18 = vpop.f32.mrb[24].mxu0 }
0x1b20   : > { %v3048_v21 = vadd.f32 %v3044_v18, %v2809_v9  ;;  %v3951_v22 = vpop.f32.mrb[25].mxu0 }
0x1b22   : > { %v3057_v23 = vadd.f32 %v3598_v19, %v3048_v21 }
0x1b24   : > { %v3058_v24 = vadd.f32 %v3057_v23, %v4588_v57  ;;  %v3605_v57 = vld [vmem:[%s4864_s10 + $0x30] sm:$0xff] }
0x1b25   : > { %v4077_v34 = vpack.c.bf16 %v3606_v33, %v3605_v57  ;;  %v3630_v33 = vld [vmem:[%s4868_s14 + $0x1] ss:$0 sm:$0xff] }
0x1b26   : > { %v3063_v25 = vsel %vm722_vm2, %v3058_v24, 0.0 }
0x1b27   : > { %3064 = vadd.xlane.f32.xlu1 %v3063_v25  ;;  %4078 = vmatpush3.bf16.msra.mxu1 %v4077_v34  ;;  %v3306_v25 = vld [vmem:[%s4870_s16] sm:$0xff] }
0x1b28   : > { %4103 = vmatprep.subr.bf16.mxu1 %v4191_v2 }
0x1bb4   : > { %v3065_v26 = vpop.xlane.xlu1 %3064 }
0x1bb5   : > { %v3066_v27 = vmul.f32 0.03125, %v3065_v26  ;;  %v3307_v26 = vld [vmem:[%s4870_s16 + $0x8] sm:$0xff] }
0x1bb7   : > { %v3067_v28 = vsub.f32 %v3058_v24, %v3066_v27  ;;  %v4104_v27 = vpack.c.bf16 %v3307_v26, %v3306_v25 }
0x1bb9   : > { %v3068_v29 = vmul.f32 %v3067_v28, %v3067_v28 }
0x1bbb   : > { %v3069_v30 = vsel %vm722_vm2, %v3068_v29, 0.0  ;;  %v3309_v29 = vld [vmem:[%s4870_s16 + $0x18] sm:$0xff] }
0x1bbc   : > { %3070 = vadd.xlane.f32.xlu1 %v3069_v30 }
0x1c49   : > { %v3071_v55 = vpop.xlane.xlu1 %3070 }
0x1c4a   : > { %v3072_v56 = vmul.f32 0.03125, %v3071_v55 }
0x1c4c   : > { %v3073_v58 = vadd.f32 1e-05, %v3072_v56 }
0x1c4e   : > { %4179 = vrsqrt.f32 %v3073_v58 }
0x1c58   : > { %v4180_v59 = vpop.eup %4179 }
0x1c59   : > { %v3075_v62 = vmul.f32 %v4180_v59, %v3067_v28  ;;  %v3308_v28 = vld [vmem:[%s4870_s16 + $0x10] sm:$0xff] }
0x1c5a   : > { %v4107_v30 = vpack.c.bf16 %v3309_v29, %v3308_v28 }
0x1c5b   : > { %v3082_v0 = vmul.f32 %v3601_v61, %v3075_v62 }
0x1c5d   : > { %v3089_v1 = vadd.f32 %v3602_v63, %v3082_v0 }
0x1c5f   : > { %3961 = vmatmul.mubr.msk.f32.vlgmr.msra.gmra.mrb[32].mxu1 %vm722_vm2, %v3089_v1 }
0x1c60   : > { %4006 = vmatprep.mubr.msk.f32.mxu1 %vm4192_vm0, %v4193_v4  ;;  %4105 = vmatpush3.bf16.msra.mxu1 %v4104_v27 }
0x1c61   : > { %4106 = vmatprep.subr.bf16.mxu1 %v4191_v2 }
0x1c64   : > { %4108 = vmatpush3.bf16.msra.mxu1 %v4107_v30 }
0x1c65   : > { %4109 = vmatprep.subr.bf16.mxu1 %v4191_v2 }
0x1d32   : > { %v3172_v8 = vpop.f32.mrb[32].mxu1 }
0x1d33   : > { %v3173_v60 = vadd.f32 %v3608_v7, %v3172_v8  ;;  %v3962_v9 = vpop.f32.mrb[33].mxu1 }
0x1d35   : > { %v3176_v10 = vmax.f32 %v3173_v60, 0.0 }
0x1d37   : > { %3996 = vmatmul.mubr.f32.vlgmr.msra.gmra.mrb[26].mxu0 %v3176_v10 }
0x1e0a   : > { %v3268_v12 = vpop.f32.mrb[26].mxu0 }
0x1e0b   : > { %v3269_v13 = vadd.f32 %v3627_v11, %v3268_v12  ;;  %v3997_v14 = vpop.f32.mrb[27].mxu0 }
0x1e0d   : > { %v3272_v16 = vadd.f32 %v3269_v13, %v3089_v1 }
0x1e0f   : > { %v3277_v18 = vsel %vm722_vm2, %v3272_v16, 0.0 }
0x1e10   : > { %3278 = vadd.xlane.f32.xlu1 %v3277_v18 }
0x1e9d   : > { %v3279_v19 = vpop.xlane.xlu1 %3278 }
0x1e9e   : > { %v3280_v21 = vmul.f32 0.03125, %v3279_v19 }
0x1ea0   : > { %v3281_v22 = vsub.f32 %v3272_v16, %v3280_v21 }
0x1ea2   : > { %v3282_v23 = vmul.f32 %v3281_v22, %v3281_v22 }
0x1ea4   : > { %v3283_v24 = vsel %vm722_vm2, %v3282_v23, 0.0 }
0x1ea5   : > { %3284 = vadd.xlane.f32.xlu1 %v3283_v24 }
0x1f32   : > { %v3285_v20 = vpop.xlane.xlu1 %3284 }
0x1f33   : > { %v3286_v31 = vmul.f32 0.03125, %v3285_v20 }
0x1f35   : > { %v3287_v32 = vadd.f32 1e-05, %v3286_v31 }
0x1f37   : > { %4181 = vrsqrt.f32 %v3287_v32 }
0x1f41   : > { %v4182_v57 = vpop.eup %4181 }
0x1f42   : > { %v3289_v34 = vmul.f32 %v4182_v57, %v3281_v22 }
0x1f44   : > { %v3296_v36 = vmul.f32 %v3630_v33, %v3289_v34 }
0x1f46   : > { %v3303_v37 = vadd.f32 %v3631_v35, %v3296_v36 }
0x1f48   : > { %v3304_v40 = vadd.f32 %v3303_v37, %v4361_v15  ;;  %v3395_v15 = vld [vmem:[%s4872_s18 + $0x20] sm:$0xff] }
0x1f49   : > { %v4116_v47 = vpack.c.bf16 %v3396_v46, %v3395_v15 }
0x1f4a   : > { %v3305_v42 = vmax.f32 %v3304_v40, 0.0 }
0x1f4c   : > { %4007 = vmatmul.mubr.msk.f32.vlgmr.msra.gmra.mrb[34].mxu1 %vm722_vm2, %v3305_v42 }
0x1f4d   : > { %4111 = vmatpush3.bf16.msra.mxu1 %v4110_v41  ;;  %4025 = vmatprep.mubr.msk.f32.mxu1 %vm4192_vm0, %v4193_v4  ;;  %v3397_v4 = vld [vmem:[%s4872_s18 + $0x30] sm:$0xff] }
0x1f4e   : > { %4112 = vmatprep.subr.bf16.mxu1 %v4191_v2  ;;  %v4119_v49 = vpack.c.bf16 %v3398_v48, %v3397_v4 }
0x1f51   : > { %4114 = vmatpush3.bf16.msra.mxu1 %v4113_v45 }
0x1f52   : > { %4115 = vmatprep.subr.bf16.mxu1 %v4191_v2 }
0x1f55   : > { %4117 = vmatpush3.bf16.msra.mxu1 %v4116_v47 }
0x1f56   : > { %4118 = vmatprep.subr.bf16.mxu1 %v4191_v2  ;;  %v3634_v2 = vld [vmem:[%s4873_s19] ss:$0 sm:$0xff] }
0x1f59   : > { %4120 = vmatpush3.bf16.msra.mxu1 %v4119_v49 }
0x201f   : > { %v3386_v51 = vpop.f32.mrb[34].mxu1 }
0x2020   : > { %v3387_v52 = vadd.f32 %v3632_v50, %v3386_v51  ;;  %v4008_v17 = vpop.f32.mrb[35].mxu1 }
0x2022   : > { %v3390_v53 = vmax.f32 %v3387_v52, 0.0 }
0x2024   : > { %4026 = vmatmul.mubr.msk.f32.vlgmr.msra.gmra.mrb[36].mxu1 %vm3406_vm4, %v3390_v53 }
0x20f7   : > { %v3476_v54 = vpop.f32.mrb[36].mxu1 }
0x20f8   : > { %v3477_v55 = vadd.f32 %v3634_v2, %v3476_v54  ;;  %v4027_v56 = vpop.f32.mrb[37].mxu1 }
0x20fa   : > { %3481 = vst.msk [vmem:[%s624_s24] sm:$0xff] %vm3480_vm5, %v3477_v55 }
0x20fb PF: > { %s30_s1 = sadd.s32 1, %s4189_s1  }
0x20fc   : > { %p27_p4 = scmp.ge.s32.totalorder %s30_s1, 4  }
0x20fe   :  { %29 = sbr.rel (!%p27_p4) target bundleno = 6 (0x6), region = 142 }

</bundles_post_ra>
